<compile_context>
chip_gen: v7x
topology: tpu7x:2x2x1
jax: 0.10.0
libtpu: 0.0.40
codegen_flags: <defaults>
</compile_context>

<pallas_src>
import jax
import jax.numpy as jnp
from jax.experimental import pallas as pl
from jax.experimental.pallas import tpu as pltpu

BN_EPS = 1e-5

# VMEM budgets (bytes), chosen for the smallest physical VMEM of the targets
# (v7x: 64 MiB/TC).  v5e/v6e (128 MiB) simply get more headroom.
_FUSED_VMEM_BUDGET = 40 << 20   # eligibility threshold for the fused fast path
_TILE_VMEM_BUDGET = 36 << 20    # working-set target when choosing tiles
_VMEM_LIMIT_CAP = 48 << 20      # never request more scoped VMEM than this
_VMEM_LIMIT_FLOOR = 16 << 20


# --------------------------------------------------------------------------
# Shared BatchNorm1d(train) + ReLU epilogue (f32).
# --------------------------------------------------------------------------
def _bn_relu(h, gamma, beta, inv_batch):
    """Training-mode BN (biased variance) + ReLU.

    Batch-axis reductions via jnp.sum(axis=0) -> XLU cross-sublane reduce
    (off the MXU/VALU critical path; avoids f32 MXU emulation on v5e).
    NOTE: assumes `h` holds the FULL batch — B must never be tiled, or the
    per-feature statistics silently become per-batch-tile statistics.
    """
    mean = jnp.sum(h, axis=0, keepdims=True) * inv_batch
    centered = h - mean
    var = jnp.sum(centered * centered, axis=0, keepdims=True) * inv_batch
    h = centered * jax.lax.rsqrt(var + BN_EPS) * gamma + beta
    return jnp.maximum(h, 0.0)


# --------------------------------------------------------------------------
# Fused fast path: the whole projector in one pallas_call (weights resident).
# --------------------------------------------------------------------------
def _make_fused_kernel(inv_batch):
    def kernel(x_ref, w1_ref, b1_ref, g1_ref, bt1_ref,
               w2_ref, b2_ref, g2_ref, bt2_ref,
               w3_ref, b3_ref, o_ref):
        h = jnp.dot(x_ref[...], w1_ref[...],
                    preferred_element_type=jnp.float32) + b1_ref[...]
        h = _bn_relu(h, g1_ref[...], bt1_ref[...], inv_batch).astype(jnp.bfloat16)
        h = jnp.dot(h, w2_ref[...],
                    preferred_element_type=jnp.float32) + b2_ref[...]
        h = _bn_relu(h, g2_ref[...], bt2_ref[...], inv_batch).astype(jnp.bfloat16)
        o_ref[...] = (jnp.dot(h, w3_ref[...],
                              preferred_element_type=jnp.float32)
                      + b3_ref[...]).astype(o_ref.dtype)
    return kernel


def _fused_footprint(B, D, P):
    weights = (D * P + 2 * P * P) * 2          # bf16 weights
    vectors = 7 * 8 * P * 4                    # biases/gammas/betas, sublane-padded f32
    x_bytes = B * D * 2                        # bf16 input
    out_bytes = B * P * 4                      # f32 output
    inter = 4 * B * P * 4                      # live f32 intermediates (upper bound)
    return 2 * (weights + vectors + x_bytes + out_bytes) + inter


def _fused_projector(x_bf16, p):
    B, D = x_bf16.shape
    P = p["w1"].shape[1]

    def full(shape):  # whole-array block, single grid step
        return pl.BlockSpec(shape, lambda i: (0, 0))

    footprint = _fused_footprint(B, D, P)
    vmem_limit = max(_VMEM_LIMIT_FLOOR, min(2 * footprint, _VMEM_LIMIT_CAP))

    return pl.pallas_call(
        _make_fused_kernel(1.0 / B),
        out_shape=jax.ShapeDtypeStruct((B, P), jnp.float32),
        grid=(1,),
        in_specs=[
            full((B, D)),
            full((D, P)), full((1, P)), full((1, P)), full((1, P)),
            full((P, P)), full((1, P)), full((1, P)), full((1, P)),
            full((P, P)), full((1, P)),
        ],
        out_specs=full((B, P)),
        compiler_params=pltpu.CompilerParams(
            dimension_semantics=("arbitrary",),
            vmem_limit_bytes=vmem_limit,
        ),
    )(x_bf16,
      p["w1"], p["b1"], p["g1"], p["bt1"],
      p["w2"], p["b2"], p["g2"], p["bt2"],
      p["w3"], p["b3"])


# --------------------------------------------------------------------------
# Tiled path:  out = x @ W + b  [-> BatchNorm1d(train) -> ReLU]
# grid = (N // tn, K // tk); K (reduction) is the last grid axis.
# --------------------------------------------------------------------------
def _make_linear_bn_relu_kernel(inv_batch):
    def kernel(x_ref, w_ref, b_ref, g_ref, bt_ref, o_ref, acc_ref):
        k = pl.program_id(1)

        @pl.when(k == 0)
        def _():
            acc_ref[...] = jnp.zeros_like(acc_ref)

        acc_ref[...] += jnp.dot(x_ref[...], w_ref[...],
                                preferred_element_type=jnp.float32)

        @pl.when(k == pl.num_programs(1) - 1)
        def _():
            h = acc_ref[...] + b_ref[...]
            o_ref[...] = _bn_relu(h, g_ref[...], bt_ref[...],
                                  inv_batch).astype(o_ref.dtype)
    return kernel


def _linear_kernel(x_ref, w_ref, b_ref, o_ref):
    # Final (no-BN) layer: accumulate directly into the resident f32 output
    # block — no scratch accumulator, no epilogue copy.
    k = pl.program_id(1)

    @pl.when(k == 0)
    def _():
        o_ref[...] = jnp.broadcast_to(b_ref[...], o_ref.shape).astype(o_ref.dtype)

    o_ref[...] += jnp.dot(x_ref[...], w_ref[...],
                          preferred_element_type=jnp.float32)


def _tile_candidates(dim, cap):
    cands = [t for t in range(128, min(dim, cap) + 1, 128) if dim % t == 0]
    if dim <= cap and dim not in cands:
        cands.append(dim)          # full extent always satisfies the (8,128) rule
    if not cands:
        cands = [dim]
    return sorted(cands, reverse=True)


def _tiled_footprint(B, tk, tn, *, has_bn, out_bytes, w_bufs=2):
    x_blk = 2 * B * tk * 2                         # bf16 x, double-buffered
    w_blk = w_bufs * tk * tn * 2                   # bf16 weights
    vec_blk = (3 if has_bn else 1) * 2 * 8 * tn * 4  # bias/gamma/beta, padded
    out_blk = 2 * B * tn * out_bytes
    acc = B * tn * 4 if has_bn else 0              # f32 accumulator scratch
    return x_blk + w_blk + vec_blk + out_blk + acc


def _choose_tiles(B, K, N, *, has_bn, out_bytes, max_tk, max_tn):
    def fits(tk, tn):
        return _tiled_footprint(B, tk, tn, has_bn=has_bn,
                                out_bytes=out_bytes) <= _TILE_VMEM_BUDGET

    tn_cands = _tile_candidates(N, max_tn)
    tk_cands = _tile_candidates(K, max_tk)

    # Pass 1: keep x fully resident (tk == K): the x block index never
    # changes, so x is DMA'd exactly once per layer — no re-streaming.
    if K <= max_tk:
        for tn in tn_cands:
            if fits(K, tn):
                return K, tn
    # Pass 2: maximize tn first (x traffic scales with N/tn), then tk.
    for tn in tn_cands:
        for tk in tk_cands:
            if fits(tk, tn):
                return tk, tn
    # Fallback: smallest candidates.
    return tk_cands[-1], tn_cands[-1]


def _tiled_linear(x, w, b, gamma=None, beta=None, *, out_dtype,
                  max_tk=4096, max_tn=1024):
    """y = x @ w + b, optionally followed by BatchNorm1d(train) + ReLU."""
    B, K = x.shape
    K2, N = w.shape
    assert K == K2, (K, K2)
    apply_bn = gamma is not None
    # The fused BN epilogue requires the FULL batch per block: B is never
    # tiled here.  Do NOT add a batch grid axis without reworking the stats.
    if not apply_bn:
        assert jnp.dtype(out_dtype) == jnp.float32, (
            "no-BN path accumulates directly into the f32 output block")

    out_bytes = jnp.dtype(out_dtype).itemsize
    tk, tn = _choose_tiles(B, K, N, has_bn=apply_bn, out_bytes=out_bytes,
                           max_tk=max_tk, max_tn=max_tn)
    grid_n, grid_k = N // tn, K // tk
    grid = (grid_n, grid_k)

    # Small-batch / weight-bandwidth-bound regime: deeper weight pipelining so
    # the HBM weight stream stays saturated while the MXU finishes instantly.
    w_bufs = 3 if (B <= 64 and grid_k >= 3) else 2
    if w_bufs == 3:
        w_spec = pl.BlockSpec((tk, tn), lambda n, k: (k, n),
                              pipeline_mode=pl.Buffered(3))
    else:
        w_spec = pl.BlockSpec((tk, tn), lambda n, k: (k, n))

    in_specs = [
        pl.BlockSpec((B, tk), lambda n, k: (0, k)),   # activations (full batch)
        w_spec,                                       # weights
        pl.BlockSpec((1, tn), lambda n, k: (0, n)),   # bias
    ]
    args = [x, w, b]
    scratch = []
    if apply_bn:
        in_specs += [
            pl.BlockSpec((1, tn), lambda n, k: (0, n)),  # BN gamma
            pl.BlockSpec((1, tn), lambda n, k: (0, n)),  # BN beta
        ]
        args += [gamma, beta]
        scratch = [pltpu.VMEM((B, tn), jnp.float32)]
        kernel = _make_linear_bn_relu_kernel(1.0 / B)
    else:
        kernel = _linear_kernel

    footprint = _tiled_footprint(B, tk, tn, has_bn=apply_bn,
                                 out_bytes=out_bytes, w_bufs=w_bufs)
    vmem_limit = max(_VMEM_LIMIT_FLOOR,
                     min(int(footprint * 1.25) + (2 << 20), _VMEM_LIMIT_CAP))

    return pl.pallas_call(
        kernel,
        out_shape=jax.ShapeDtypeStruct((B, N), out_dtype),
        grid_spec=pltpu.PrefetchScalarGridSpec(
            num_scalar_prefetch=0,
            grid=grid,
            in_specs=in_specs,
            out_specs=pl.BlockSpec((B, tn), lambda n, k: (0, n)),
            scratch_shapes=scratch,
        ),
        compiler_params=pltpu.CompilerParams(
            # N-tiles are independent (BN stats are per-feature) -> parallel
            # (v7x 2-TC sharding); K is the accumulation axis -> arbitrary, last.
            dimension_semantics=("parallel", "arbitrary"),
            vmem_limit_bytes=vmem_limit,
        ),
    )(*args)


# --------------------------------------------------------------------------
# Full Projector forward.
# --------------------------------------------------------------------------
def projector_forward(x, params, *, force_tiled=False, max_tile=None):
    """Linear->BN->ReLU -> Linear->BN->ReLU -> Linear (BN in training mode)."""
    B, D = x.shape
    P = params["w1"].shape[1]
    h = x.astype(jnp.bfloat16)

    if not force_tiled and _fused_footprint(B, D, P) <= _FUSED_VMEM_BUDGET:
        # Fast path: single pallas_call, weights resident, no HBM round trips
        # for inter-layer activations.
        return _fused_projector(h, params)

    tile_kw = {} if max_tile is None else dict(max_tk=max_tile, max_tn=max_tile)
    h = _tiled_linear(h, params["w1"], params["b1"], params["g1"], params["bt1"],
                      out_dtype=jnp.bfloat16, **tile_kw)
    h = _tiled_linear(h, params["w2"], params["b2"], params["g2"], params["bt2"],
                      out_dtype=jnp.bfloat16, **tile_kw)
    return _tiled_linear(h, params["w3"], params["b3"],
                         out_dtype=jnp.float32, **tile_kw)


def init_params(key, D, P):
    """Deterministic synthetic parameters (shapes match nn.Linear / BatchNorm1d)."""
    ks = jax.random.split(key, 6)

    def lin(k, fan_in, fan_out):
        bound = 1.0 / jnp.sqrt(fan_in)
        w = jax.random.uniform(k, (fan_in, fan_out), jnp.float32, -bound, bound)
        return w.astype(jnp.bfloat16)  # bf16 weights: native MXU input dtype

    return {
        "w1": lin(ks[0], D, P),
        "b1": jax.random.uniform(ks[1], (1, P), jnp.float32, -0.1, 0.1),
        "g1": jnp.ones((1, P), jnp.float32),    # BatchNorm1d weight
        "bt1": jnp.zeros((1, P), jnp.float32),  # BatchNorm1d bias
        "w2": lin(ks[2], P, P),
        "b2": jax.random.uniform(ks[3], (1, P), jnp.float32, -0.1, 0.1),
        "g2": jnp.ones((1, P), jnp.float32),
        "bt2": jnp.zeros((1, P), jnp.float32),
        "w3": lin(ks[4], P, P),
        "b3": jax.random.uniform(ks[5], (1, P), jnp.float32, -0.1, 0.1),
    }


def _reference_forward(x, p):
    """Pure-JAX reference with the same dtype plan (bf16 inputs, f32 accum/BN)."""
    def bn(h, g, b):
        m = jnp.mean(h, axis=0, keepdims=True)
        v = jnp.mean((h - m) ** 2, axis=0, keepdims=True)  # biased variance
        return (h - m) * jax.lax.rsqrt(v + BN_EPS) * g + b

    h = x.astype(jnp.bfloat16)
    h = jnp.dot(h, p["w1"], preferred_element_type=jnp.float32) + p["b1"]
    h = jnp.maximum(bn(h, p["g1"], p["bt1"]), 0.0).astype(jnp.bfloat16)
    h = jnp.dot(h, p["w2"], preferred_element_type=jnp.float32) + p["b2"]
    h = jnp.maximum(bn(h, p["g2"], p["bt2"]), 0.0).astype(jnp.bfloat16)
    return jnp.dot(h, p["w3"], preferred_element_type=jnp.float32) + p["b3"]


if __name__ == "__main__":
    # Small shapes consistent with the module defaults:
    # Projector(D=128, proj_dim=512), batch of 8 feature vectors.
    B, D, P = 8, 128, 512

    key = jax.random.PRNGKey(0)
    kx, kp = jax.random.split(key)
    x = jax.random.normal(kx, (B, D), jnp.float32)
    params = init_params(kp, D, P)

    ref = _reference_forward(x, params)

    # 1) Fused single-call fast path (auto-selected at these shapes).
    out_fused = jax.block_until_ready(projector_forward(x, params))
    assert out_fused.shape == (B, P), out_fused.shape
    assert jnp.allclose(out_fused, ref, atol=2e-2, rtol=2e-2), "fused mismatch"

    # 2) Tiled per-layer path (what large VICReg shapes use), forced with small
    #    tiles so the multi-step accumulator, the direct-output accumulation and
    #    the Buffered(3) weight pipeline are all exercised.
    out_tiled = jax.block_until_ready(
        projector_forward(x, params, force_tiled=True, max_tile=128))
    assert out_tiled.shape == (B, P), out_tiled.shape
    assert jnp.allclose(out_tiled, ref, atol=2e-2, rtol=2e-2), "tiled mismatch"

    print("KERNEL_OK")
</pallas_src>

<mosaic_0001>
module attributes {stable_mosaic.version = 11 : i64} {
  func.func @kernel(%arg0: i32, %arg1: memref<8x128xbf16, #tpu.memory_space<vmem>>, %arg2: memref<128x512xbf16, #tpu.memory_space<vmem>>, %arg3: memref<1x512xf32, #tpu.memory_space<vmem>>, %arg4: memref<1x512xf32, #tpu.memory_space<vmem>>, %arg5: memref<1x512xf32, #tpu.memory_space<vmem>>, %arg6: memref<512x512xbf16, #tpu.memory_space<vmem>>, %arg7: memref<1x512xf32, #tpu.memory_space<vmem>>, %arg8: memref<1x512xf32, #tpu.memory_space<vmem>>, %arg9: memref<1x512xf32, #tpu.memory_space<vmem>>, %arg10: memref<512x512xbf16, #tpu.memory_space<vmem>>, %arg11: memref<1x512xf32, #tpu.memory_space<vmem>>, %arg12: memref<8x512xf32, #tpu.memory_space<vmem>>) attributes {dimension_semantics = [#tpu.dimension_semantics<arbitrary>], iteration_bounds = array<i64: 1>, scalar_prefetch = 0 : i64, scratch_operands = 0 : i64, tpu.core_type = #tpu.core_type<tc>, window_params = [{pipeline_mode = #tpu.pipeline_mode<synchronous>, transform_indices = @transform_0, window_bounds = array<i64: 8, 128>}, {pipeline_mode = #tpu.pipeline_mode<synchronous>, transform_indices = @transform_1, window_bounds = array<i64: 128, 512>}, {pipeline_mode = #tpu.pipeline_mode<synchronous>, transform_indices = @transform_2, window_bounds = array<i64: 1, 512>}, {pipeline_mode = #tpu.pipeline_mode<synchronous>, transform_indices = @transform_3, window_bounds = array<i64: 1, 512>}, {pipeline_mode = #tpu.pipeline_mode<synchronous>, transform_indices = @transform_4, window_bounds = array<i64: 1, 512>}, {pipeline_mode = #tpu.pipeline_mode<synchronous>, transform_indices = @transform_5, window_bounds = array<i64: 512, 512>}, {pipeline_mode = #tpu.pipeline_mode<synchronous>, transform_indices = @transform_6, window_bounds = array<i64: 1, 512>}, {pipeline_mode = #tpu.pipeline_mode<synchronous>, transform_indices = @transform_7, window_bounds = array<i64: 1, 512>}, {pipeline_mode = #tpu.pipeline_mode<synchronous>, transform_indices = @transform_8, window_bounds = array<i64: 1, 512>}, {pipeline_mode = #tpu.pipeline_mode<synchronous>, transform_indices = @transform_9, window_bounds = array<i64: 512, 512>}, {pipeline_mode = #tpu.pipeline_mode<synchronous>, transform_indices = @transform_10, window_bounds = array<i64: 1, 512>}, {pipeline_mode = #tpu.pipeline_mode<synchronous>, transform_indices = @transform_11, window_bounds = array<i64: 8, 512>}]} {
    %c0 = arith.constant 0 : index
    %c0_0 = arith.constant 0 : index
    %0 = vector.load %arg1[%c0, %c0_0] : memref<8x128xbf16, #tpu.memory_space<vmem>>, vector<8x128xbf16>
    %c0_1 = arith.constant 0 : index
    %c0_2 = arith.constant 0 : index
    %1 = vector.load %arg2[%c0_1, %c0_2] : memref<128x512xbf16, #tpu.memory_space<vmem>>, vector<128x512xbf16>
    %cst = arith.constant dense<0.000000e+00> : vector<8x512xf32>
    %2 = tpu.matmul %0, %1, %cst {dimension_numbers = #tpu.dot_dimension_numbers<[1], [0], [0], [1], [0, 0, 1, 1], [], []>} : vector<8x128xbf16>, vector<128x512xbf16>, vector<8x512xf32> -> vector<8x512xf32>
    %c0_3 = arith.constant 0 : index
    %c0_4 = arith.constant 0 : index
    %3 = vector.load %arg3[%c0_3, %c0_4] : memref<1x512xf32, #tpu.memory_space<vmem>>, vector<1x512xf32>
    %4 = vector.broadcast %3 : vector<1x512xf32> to vector<8x512xf32>
    %5 = arith.addf %2, %4 : vector<8x512xf32>
    %c0_5 = arith.constant 0 : index
    %c0_6 = arith.constant 0 : index
    %6 = vector.load %arg4[%c0_5, %c0_6] : memref<1x512xf32, #tpu.memory_space<vmem>>, vector<1x512xf32>
    %c0_7 = arith.constant 0 : index
    %c0_8 = arith.constant 0 : index
    %7 = vector.load %arg5[%c0_7, %c0_8] : memref<1x512xf32, #tpu.memory_space<vmem>>, vector<1x512xf32>
    %cst_9 = arith.constant dense<0.000000e+00> : vector<512xf32>
    %8 = vector.multi_reduction <add>, %5, %cst_9 [0] : vector<8x512xf32> to vector<512xf32>
    %9 = vector.shape_cast %8 : vector<512xf32> to vector<1x512xf32>
    %cst_10 = arith.constant 1.250000e-01 : f32
    %10 = vector.broadcast %cst_10 : f32 to vector<1x512xf32>
    %11 = arith.mulf %9, %10 : vector<1x512xf32>
    %12 = vector.broadcast %11 : vector<1x512xf32> to vector<8x512xf32>
    %13 = arith.subf %5, %12 : vector<8x512xf32>
    %14 = arith.mulf %13, %13 : vector<8x512xf32>
    %cst_11 = arith.constant dense<0.000000e+00> : vector<512xf32>
    %15 = vector.multi_reduction <add>, %14, %cst_11 [0] : vector<8x512xf32> to vector<512xf32>
    %16 = vector.shape_cast %15 : vector<512xf32> to vector<1x512xf32>
    %cst_12 = arith.constant 1.250000e-01 : f32
    %17 = vector.broadcast %cst_12 : f32 to vector<1x512xf32>
    %18 = arith.mulf %16, %17 : vector<1x512xf32>
    %cst_13 = arith.constant 9.99999974E-6 : f32
    %19 = vector.broadcast %cst_13 : f32 to vector<1x512xf32>
    %20 = arith.addf %18, %19 : vector<1x512xf32>
    %21 = math.rsqrt %20 : vector<1x512xf32>
    %22 = vector.broadcast %21 : vector<1x512xf32> to vector<8x512xf32>
    %23 = arith.mulf %13, %22 : vector<8x512xf32>
    %24 = vector.broadcast %6 : vector<1x512xf32> to vector<8x512xf32>
    %25 = arith.mulf %23, %24 : vector<8x512xf32>
    %26 = vector.broadcast %7 : vector<1x512xf32> to vector<8x512xf32>
    %27 = arith.addf %25, %26 : vector<8x512xf32>
    %cst_14 = arith.constant 0.000000e+00 : f32
    %28 = vector.broadcast %cst_14 : f32 to vector<8x512xf32>
    %29 = arith.maximumf %27, %28 : vector<8x512xf32>
    %30 = arith.truncf %29 : vector<8x512xf32> to vector<8x512xbf16>
    %c0_15 = arith.constant 0 : index
    %c0_16 = arith.constant 0 : index
    %31 = vector.load %arg6[%c0_15, %c0_16] : memref<512x512xbf16, #tpu.memory_space<vmem>>, vector<512x512xbf16>
    %cst_17 = arith.constant dense<0.000000e+00> : vector<8x512xf32>
    %32 = tpu.matmul %30, %31, %cst_17 {dimension_numbers = #tpu.dot_dimension_numbers<[1], [0], [0], [1], [0, 0, 1, 1], [], []>} : vector<8x512xbf16>, vector<512x512xbf16>, vector<8x512xf32> -> vector<8x512xf32>
    %c0_18 = arith.constant 0 : index
    %c0_19 = arith.constant 0 : index
    %33 = vector.load %arg7[%c0_18, %c0_19] : memref<1x512xf32, #tpu.memory_space<vmem>>, vector<1x512xf32>
    %34 = vector.broadcast %33 : vector<1x512xf32> to vector<8x512xf32>
    %35 = arith.addf %32, %34 : vector<8x512xf32>
    %c0_20 = arith.constant 0 : index
    %c0_21 = arith.constant 0 : index
    %36 = vector.load %arg8[%c0_20, %c0_21] : memref<1x512xf32, #tpu.memory_space<vmem>>, vector<1x512xf32>
    %c0_22 = arith.constant 0 : index
    %c0_23 = arith.constant 0 : index
    %37 = vector.load %arg9[%c0_22, %c0_23] : memref<1x512xf32, #tpu.memory_space<vmem>>, vector<1x512xf32>
    %cst_24 = arith.constant dense<0.000000e+00> : vector<512xf32>
    %38 = vector.multi_reduction <add>, %35, %cst_24 [0] : vector<8x512xf32> to vector<512xf32>
    %39 = vector.shape_cast %38 : vector<512xf32> to vector<1x512xf32>
    %cst_25 = arith.constant 1.250000e-01 : f32
    %40 = vector.broadcast %cst_25 : f32 to vector<1x512xf32>
    %41 = arith.mulf %39, %40 : vector<1x512xf32>
    %42 = vector.broadcast %41 : vector<1x512xf32> to vector<8x512xf32>
    %43 = arith.subf %35, %42 : vector<8x512xf32>
    %44 = arith.mulf %43, %43 : vector<8x512xf32>
    %cst_26 = arith.constant dense<0.000000e+00> : vector<512xf32>
    %45 = vector.multi_reduction <add>, %44, %cst_26 [0] : vector<8x512xf32> to vector<512xf32>
    %46 = vector.shape_cast %45 : vector<512xf32> to vector<1x512xf32>
    %cst_27 = arith.constant 1.250000e-01 : f32
    %47 = vector.broadcast %cst_27 : f32 to vector<1x512xf32>
    %48 = arith.mulf %46, %47 : vector<1x512xf32>
    %cst_28 = arith.constant 9.99999974E-6 : f32
    %49 = vector.broadcast %cst_28 : f32 to vector<1x512xf32>
    %50 = arith.addf %48, %49 : vector<1x512xf32>
    %51 = math.rsqrt %50 : vector<1x512xf32>
    %52 = vector.broadcast %51 : vector<1x512xf32> to vector<8x512xf32>
    %53 = arith.mulf %43, %52 : vector<8x512xf32>
    %54 = vector.broadcast %36 : vector<1x512xf32> to vector<8x512xf32>
    %55 = arith.mulf %53, %54 : vector<8x512xf32>
    %56 = vector.broadcast %37 : vector<1x512xf32> to vector<8x512xf32>
    %57 = arith.addf %55, %56 : vector<8x512xf32>
    %cst_29 = arith.constant 0.000000e+00 : f32
    %58 = vector.broadcast %cst_29 : f32 to vector<8x512xf32>
    %59 = arith.maximumf %57, %58 : vector<8x512xf32>
    %60 = arith.truncf %59 : vector<8x512xf32> to vector<8x512xbf16>
    %c0_30 = arith.constant 0 : index
    %c0_31 = arith.constant 0 : index
    %61 = vector.load %arg10[%c0_30, %c0_31] : memref<512x512xbf16, #tpu.memory_space<vmem>>, vector<512x512xbf16>
    %cst_32 = arith.constant dense<0.000000e+00> : vector<8x512xf32>
    %62 = tpu.matmul %60, %61, %cst_32 {dimension_numbers = #tpu.dot_dimension_numbers<[1], [0], [0], [1], [0, 0, 1, 1], [], []>} : vector<8x512xbf16>, vector<512x512xbf16>, vector<8x512xf32> -> vector<8x512xf32>
    %c0_33 = arith.constant 0 : index
    %c0_34 = arith.constant 0 : index
    %63 = vector.load %arg11[%c0_33, %c0_34] : memref<1x512xf32, #tpu.memory_space<vmem>>, vector<1x512xf32>
    %64 = vector.broadcast %63 : vector<1x512xf32> to vector<8x512xf32>
    %65 = arith.addf %62, %64 : vector<8x512xf32>
    %c0_35 = arith.constant 0 : index
    %c0_36 = arith.constant 0 : index
    %66 = vector.load %arg12[%c0_35, %c0_36] : memref<8x512xf32, #tpu.memory_space<vmem>>, vector<8x512xf32>
    tpu.vector_store %arg12[%c0_35, %c0_36], %65 {strides = array<i32>} : memref<8x512xf32, #tpu.memory_space<vmem>>, vector<8x512xf32>,
    return
  }
  func.func @transform_0(%arg0: i32) -> (i32, i32) {
    %c0_i32 = arith.constant 0 : i32
    %c0_i32_0 = arith.constant 0 : i32
    %c0_i32_1 = arith.constant 0 : i32
    return %c0_i32, %c0_i32_0 : i32, i32
  }
  func.func @transform_1(%arg0: i32) -> (i32, i32) {
    %c0_i32 = arith.constant 0 : i32
    %c0_i32_0 = arith.constant 0 : i32
    %c0_i32_1 = arith.constant 0 : i32
    return %c0_i32, %c0_i32_0 : i32, i32
  }
  func.func @transform_2(%arg0: i32) -> (i32, i32) {
    %c0_i32 = arith.constant 0 : i32
    %c0_i32_0 = arith.constant 0 : i32
    %c0_i32_1 = arith.constant 0 : i32
    return %c0_i32, %c0_i32_0 : i32, i32
  }
  func.func @transform_3(%arg0: i32) -> (i32, i32) {
    %c0_i32 = arith.constant 0 : i32
    %c0_i32_0 = arith.constant 0 : i32
    %c0_i32_1 = arith.constant 0 : i32
    return %c0_i32, %c0_i32_0 : i32, i32
  }
  func.func @transform_4(%arg0: i32) -> (i32, i32) {
    %c0_i32 = arith.constant 0 : i32
    %c0_i32_0 = arith.constant 0 : i32
    %c0_i32_1 = arith.constant 0 : i32
    return %c0_i32, %c0_i32_0 : i32, i32
  }
  func.func @transform_5(%arg0: i32) -> (i32, i32) {
    %c0_i32 = arith.constant 0 : i32
    %c0_i32_0 = arith.constant 0 : i32
    %c0_i32_1 = arith.constant 0 : i32
    return %c0_i32, %c0_i32_0 : i32, i32
  }
  func.func @transform_6(%arg0: i32) -> (i32, i32) {
    %c0_i32 = arith.constant 0 : i32
    %c0_i32_0 = arith.constant 0 : i32
    %c0_i32_1 = arith.constant 0 : i32
    return %c0_i32, %c0_i32_0 : i32, i32
  }
  func.func @transform_7(%arg0: i32) -> (i32, i32) {
    %c0_i32 = arith.constant 0 : i32
    %c0_i32_0 = arith.constant 0 : i32
    %c0_i32_1 = arith.constant 0 : i32
    return %c0_i32, %c0_i32_0 : i32, i32
  }
  func.func @transform_8(%arg0: i32) -> (i32, i32) {
    %c0_i32 = arith.constant 0 : i32
    %c0_i32_0 = arith.constant 0 : i32
    %c0_i32_1 = arith.constant 0 : i32
    return %c0_i32, %c0_i32_0 : i32, i32
  }
  func.func @transform_9(%arg0: i32) -> (i32, i32) {
    %c0_i32 = arith.constant 0 : i32
    %c0_i32_0 = arith.constant 0 : i32
    %c0_i32_1 = arith.constant 0 : i32
    return %c0_i32, %c0_i32_0 : i32, i32
  }
  func.func @transform_10(%arg0: i32) -> (i32, i32) {
    %c0_i32 = arith.constant 0 : i32
    %c0_i32_0 = arith.constant 0 : i32
    %c0_i32_1 = arith.constant 0 : i32
    return %c0_i32, %c0_i32_0 : i32, i32
  }
  func.func @transform_11(%arg0: i32) -> (i32, i32) {
    %c0_i32 = arith.constant 0 : i32
    %c0_i32_0 = arith.constant 0 : i32
    %c0_i32_1 = arith.constant 0 : i32
    return %c0_i32, %c0_i32_0 : i32, i32
  }
}

</mosaic_0001>

<bundles_post_ra>
// kernel: tpu_custom_call.1
= control target key start
LH: loop header
LB: loop body
LE: loop exit
PB: predicated region body
PF: predicated region fallthrough
CT: control target
= control target key end

     0   :  { %16 = vsyncpa [#allocation3], 0  ;;  %s3677_s0 = inlined_call_operand.hbm [shape: bf16[8,128], index: 0, kind: input, shape index: {}]   ;;  %s3678_s1 = inlined_call_operand.hbm [shape: bf16[128,512], index: 1, kind: input, shape index: {}]   ;;  %s3679_s2 = inlined_call_operand.vmem [shape: f32[1,512], index: 2, kind: input, shape index: {}]   ;;  %s3680_s3 = inlined_call_operand.vmem [shape: f32[1,512], index: 3, kind: input, shape index: {}]   ;;  %s3681_s4 = inlined_call_operand.vmem [shape: f32[1,512], index: 4, kind: input, shape index: {}]   ;;  %s3682_s5 = inlined_call_operand.hbm [shape: bf16[512,512], index: 5, kind: input, shape index: {}]   ;;  %s3683_s6 = inlined_call_operand.vmem [shape: f32[1,512], index: 6, kind: input, shape index: {}]   ;;  %s3684_s7 = inlined_call_operand.vmem [shape: f32[1,512], index: 7, kind: input, shape index: {}]   ;;  %s3685_s8 = inlined_call_operand.vmem [shape: f32[1,512], index: 8, kind: input, shape index: {}]   ;;  %s3686_s9 = inlined_call_operand.hbm [shape: bf16[512,512], index: 9, kind: input, shape index: {}]   ;;  %s3687_s10 = inlined_call_operand.vmem [shape: f32[1,512], index: 10, kind: input, shape index: {}]   ;;  %s3688_s11 = inlined_call_operand.hbm [shape: f32[8,512], index: 11, kind: output, shape index: {}]  }
   0x1   :  { %17 = vsyncpa [#allocation6], 0 }
   0x2   :  { %18 = vsyncpa [#allocation9], 0 }
   0x3   :  { %19 = vsyncpa [#allocation4], 0  ;;  %s3477_s17 = smov [#allocation5]   ;;  %s3359_s21 = scalar_lea.hbm %s3678_s1, 4096 }
   0x4   :  { %s35_s18 = sshll.u32 %s3477_s17, 4  ;;  %p3360_p0 = scmp.ne.s32.totalorder %s3678_s1, %s3359_s21  ;;  %s36_s18 = int_to_ptr.vmem [resolvable:$true] %s35_s18 }
   0x5   :  { %p3363_p1 = scmp.lt.u32.totalorder %s3359_s21, %s3678_s1 }
   0x7   :  { %p3365_p2 = pnand %p3363_p1, %p3360_p0 }
   0x9   :  { %3368 = shalt.err (!%p3365_p2)
}
   0xa   :  { %s3369_s26 = scalar_lea.vmem %s36_s18, 4096  ;;  %p3374_p4 = scmp.lt.s32.totalorder %s36_s18, %s36_s18 }
   0xb   :  { %p3370_p3 = scmp.ne.s32.totalorder %s36_s18, %s3369_s26  ;;  %p3375_p5 = scmp.lt.s32.totalorder %s3369_s26, %s3369_s26 }
   0xd   :  { %p3376_p6 = por %p3375_p5, %p3374_p4 }
   0xf   :  { %p3377_p7 = pnand %p3376_p6, %p3370_p3 }
  0x11   :  { %3380 = shalt.err (!%p3377_p7)
}
  0x12   :  { %s3478_s27 = smov 256   ;;  %s3479_s28 = smov 16  }
  0x13   :  { %41 = dma.hbm_to_vmem [thread:$0]  %s3678_s1, 4096, %s36_s18, [#allocation6], %s3478_s27, %s3478_s27, %s3479_s28  }
  0x14   :  { %s3480_s12 = smov [#allocation2]   ;;  %s3481_s14 = smov [#allocation7]  }
  0x15   :  { %s26_s13 = sshll.u32 %s3480_s12, 4  ;;  %s53_s15 = sshll.u32 %s3481_s14, 4  ;;  %s27_s13 = int_to_ptr.vmem [resolvable:$true] %s26_s13  ;;  %s54_s15 = int_to_ptr.vmem [resolvable:$true] %s53_s15 }
  0x16   :  { %s3381_s19 = scalar_lea.hbm %s3677_s0, 64 }
  0x17   :  { %p3382_p8 = scmp.ne.s32.totalorder %s3677_s0, %s3381_s19  ;;  %p3385_p9 = scmp.lt.u32.totalorder %s3381_s19, %s3677_s0 }
  0x19   :  { %p3387_p10 = pnand %p3385_p9, %p3382_p8 }
  0x1b   :  { %3390 = shalt.err (!%p3387_p10)
}
  0x1c   :  { %s3391_s1 = scalar_lea.vmem %s27_s13, 64  ;;  %p3396_p12 = scmp.lt.s32.totalorder %s27_s13, %s27_s13 }
  0x1d   :  { %p3392_p11 = scmp.ne.s32.totalorder %s27_s13, %s3391_s1  ;;  %p3397_p13 = scmp.lt.s32.totalorder %s3391_s1, %s3391_s1 }
  0x1f   :  { %p3398_p0 = por %p3397_p13, %p3396_p12 }
  0x21   :  { %p3399_p1 = pnand %p3398_p0, %p3392_p11 }
  0x23   :  { %3402 = shalt.err (!%p3399_p1)
}
  0x24   :  { %29 = dma.hbm_to_vmem [thread:$0]  %s3677_s0, 64, %s27_s13, [#allocation3]  }
  0x25   :  { %s3403_s29 = scalar_lea.hbm %s3682_s5, 16384 }
  0x26   :  { %p3404_p2 = scmp.ne.s32.totalorder %s3682_s5, %s3403_s29  ;;  %p3407_p3 = scmp.lt.u32.totalorder %s3403_s29, %s3682_s5 }
  0x28   :  { %p3409_p4 = pnand %p3407_p3, %p3404_p2 }
  0x2a   :  { %3412 = shalt.err (!%p3409_p4)
}
  0x2b   :  { %s3413_s17 = scalar_lea.vmem %s54_s15, 16384  ;;  %p3418_p6 = scmp.lt.s32.totalorder %s54_s15, %s54_s15 }
  0x2c   :  { %p3414_p5 = scmp.ne.s32.totalorder %s54_s15, %s3413_s17  ;;  %p3419_p7 = scmp.lt.s32.totalorder %s3413_s17, %s3413_s17 }
  0x2e   :  { %p3420_p8 = por %p3419_p7, %p3418_p6 }
  0x30   :  { %p3421_p9 = pnand %p3420_p8, %p3414_p5 }
  0x32   :  { %3424 = shalt.err (!%p3421_p9)
}
  0x33   :  { %59 = dma.hbm_to_vmem [thread:$0]  %s3682_s5, 16384, %s54_s15, [#allocation6], %s3478_s27, %s3478_s27, %s3479_s28  }
  0x34   :  { %s3482_s19 = smov [#allocation8]   ;;  %s3425_s23 = scalar_lea.hbm %s3686_s9, 16384 }
  0x35   :  { %s71_s20 = sshll.u32 %s3482_s19, 4  ;;  %p3426_p10 = scmp.ne.s32.totalorder %s3686_s9, %s3425_s23  ;;  %s72_s20 = int_to_ptr.vmem [resolvable:$true] %s71_s20 }
  0x36   :  { %p3429_p11 = scmp.lt.u32.totalorder %s3425_s23, %s3686_s9 }
  0x38   :  { %p3431_p12 = pnand %p3429_p11, %p3426_p10 }
  0x3a   :  { %3434 = shalt.err (!%p3431_p12)
}
  0x3b   :  { %s3435_s26 = scalar_lea.vmem %s72_s20, 16384  ;;  %p3440_p0 = scmp.lt.s32.totalorder %s72_s20, %s72_s20 }
  0x3c   :  { %p3436_p13 = scmp.ne.s32.totalorder %s72_s20, %s3435_s26  ;;  %p3441_p1 = scmp.lt.s32.totalorder %s3435_s26, %s3435_s26 }
  0x3e   :  { %p3442_p2 = por %p3441_p1, %p3440_p0 }
  0x40   :  { %p3443_p3 = pnand %p3442_p2, %p3436_p13 }
  0x42   :  { %3446 = shalt.err (!%p3443_p3)
}
  0x43   :  { %77 = dma.hbm_to_vmem [thread:$0]  %s3686_s9, 16384, %s72_s20, [#allocation9], %s3478_s27, %s3478_s27, %s3479_s28  }
  0x44   :  { %3469 = dma.done.wait [#allocation3], 64  }
  0x45   :  { %3470 = vsyncadd [#allocation3], 4294967232 }
  0x46   :  { %3471 = dma.done.wait [#allocation6], 20480  }
  0x47   :  { %3472 = vsyncadd [#allocation6], 4294946816 }
  0x48   :  { %3473 = dma.done.wait [#allocation9], 16384  }
  0x49   :  { %3474 = vsyncadd [#allocation9], 4294950912  ;;  %v3483_v0 = vmov 0   ;;  %v2911_v1 = vld [vmem:[#allocation5 + $0x4] ss:$16 sps:$4 sm:$0xff]   ;;  %s3484_s17 = smov [#allocation10]  }
  0x4a   :  { %340 = vmatprep.mubr.bf16.mxu0 %v3483_v0  ;;  %381 = vmatprep.mubr.bf16.mxu1 %v3483_v0  ;;  %v2913_v2 = vld [vmem:[#allocation5] ss:$16 sps:$4 sm:$0xff]   ;;  %v2914_v3 = vld [vmem:[#allocation5 + $0x24] ss:$16 sps:$4 sm:$0xff]   ;;  %v2926_v7 = vld [vmem:[#allocation5 + $0xc] ss:$16 sps:$4 sm:$0xff]  }
  0x4b   :  { %308 = vmatprep.subr.bf16.mxu0 %v2911_v1  ;;  %v2916_v4 = vld [vmem:[#allocation5 + $0x20] ss:$16 sps:$4 sm:$0xff]   ;;  %v2917_v5 = vld [vmem:[#allocation5 + $0x44] ss:$16 sps:$4 sm:$0xff]   ;;  %v2930_v9 = vld [vmem:[#allocation5 + $0x8] ss:$16 sps:$4 sm:$0xff]   ;;  %349 = vmatprep.subr.bf16.mxu1 %v2926_v7 }
  0x4c   :  { %309 = vmatpush1.bf16.msra.mxu0 %v2913_v2  ;;  %v2919_v6 = vld [vmem:[#allocation5 + $0x40] ss:$16 sps:$4 sm:$0xff]   ;;  %v2920_v8 = vld [vmem:[#allocation5 + $0x64] ss:$16 sps:$4 sm:$0xff]   ;;  %350 = vmatpush1.bf16.msra.mxu1 %v2930_v9  ;;  %v2932_v10 = vld [vmem:[#allocation5 + $0x2c] ss:$16 sps:$4 sm:$0xff]  }
  0x4d   :  { %310 = vmatprep.subr.bf16.mxu0 %v2914_v3  ;;  %v2922_v11 = vld [vmem:[#allocation5 + $0x60] ss:$16 sps:$4 sm:$0xff]   ;;  %v2923_v12 = vld [vmem:[#allocation5 + $0x84] ss:$16 sps:$4 sm:$0xff]   ;;  %v2936_v13 = vld [vmem:[#allocation5 + $0x28] ss:$16 sps:$4 sm:$0xff]   ;;  %351 = vmatprep.subr.bf16.mxu1 %v2932_v10 }
  0x4e   :  { %v2938_v14 = vld [vmem:[#allocation5 + $0x4c] ss:$16 sps:$4 sm:$0xff]   ;;  %v2942_v15 = vld [vmem:[#allocation5 + $0x48] ss:$16 sps:$4 sm:$0xff]   ;;  %v2925_v16 = vld [vmem:[#allocation5 + $0x80] ss:$16 sps:$4 sm:$0xff]  }
  0x4f   :  { %v2944_v17 = vld [vmem:[#allocation5 + $0x6c] ss:$16 sps:$4 sm:$0xff]   ;;  %v2928_v18 = vld [vmem:[#allocation5 + $0xa4] ss:$16 sps:$4 sm:$0xff]   ;;  %v2931_v19 = vld [vmem:[#allocation5 + $0xa0] ss:$16 sps:$4 sm:$0xff]  }
  0x50   :  { %311 = vmatpush1.bf16.msra.mxu0 %v2916_v4  ;;  %352 = vmatpush1.bf16.msra.mxu1 %v2936_v13  ;;  %v2946_v20 = vld [vmem:[#allocation5 + $0x68] ss:$16 sps:$4 sm:$0xff]   ;;  %v2947_v21 = vld [vmem:[#allocation5 + $0x8c] ss:$16 sps:$4 sm:$0xff]   ;;  %v2934_v22 = vld [vmem:[#allocation5 + $0xc4] ss:$16 sps:$4 sm:$0xff]  }
  0x51   :  { %312 = vmatprep.subr.bf16.mxu0 %v2917_v5  ;;  %353 = vmatprep.subr.bf16.mxu1 %v2938_v14  ;;  %v2937_v23 = vld [vmem:[#allocation5 + $0xc0] ss:$16 sps:$4 sm:$0xff]   ;;  %v2949_v24 = vld [vmem:[#allocation5 + $0x88] ss:$16 sps:$4 sm:$0xff]   ;;  %v2950_v25 = vld [vmem:[#allocation5 + $0xac] ss:$16 sps:$4 sm:$0xff]  }
  0x52   :  { %v2940_v26 = vld [vmem:[#allocation5 + $0xe4] ss:$16 sps:$4 sm:$0xff]   ;;  %v2943_v27 = vld [vmem:[#allocation5 + $0xe0] ss:$16 sps:$4 sm:$0xff]   ;;  %v2952_v28 = vld [vmem:[#allocation5 + $0xa8] ss:$16 sps:$4 sm:$0xff]  }
  0x53   :  { %v2953_v29 = vld [vmem:[#allocation5 + $0xcc] ss:$16 sps:$4 sm:$0xff]   ;;  %v2961_v30 = vld [vmem:[#allocation7 + $0x4] ss:$16 sps:$4 sm:$0xff]   ;;  %v2955_v31 = vld [vmem:[#allocation5 + $0xc8] ss:$16 sps:$4 sm:$0xff]  }
  0x54   :  { %313 = vmatpush1.bf16.msra.mxu0 %v2919_v6  ;;  %354 = vmatpush1.bf16.msra.mxu1 %v2942_v15  ;;  %v93_v32 = vld [vmem:[#allocation2] sm:$0xf]  ;;  %v2959_v34 = vld [vmem:[#allocation7] ss:$16 sps:$4 sm:$0xff]   ;;  %v2967_v35 = vld [vmem:[#allocation7 + $0x24] ss:$16 sps:$4 sm:$0xff]  }
  0x55   :  { %314 = vmatprep.subr.bf16.mxu0 %v2920_v8  ;;  %355 = vmatprep.subr.bf16.mxu1 %v2944_v17  ;;  %v2956_v33 = vld [vmem:[#allocation5 + $0xec] ss:$16 sps:$4 sm:$0xff]   ;;  %v2958_v36 = vld [vmem:[#allocation5 + $0xe8] ss:$16 sps:$4 sm:$0xff]   ;;  %v2965_v38 = vld [vmem:[#allocation7 + $0x20] ss:$16 sps:$4 sm:$0xff]  }
  0x56   :  { %v2964_v37 = vld [vmem:[#allocation7 + $0xc] ss:$16 sps:$4 sm:$0xff]   ;;  %v2962_v39 = vld [vmem:[#allocation7 + $0x8] ss:$16 sps:$4 sm:$0xff]   ;;  %v2973_v42 = vld [vmem:[#allocation7 + $0x44] ss:$16 sps:$4 sm:$0xff]  }
  0x57   :  { %v2970_v40 = vld [vmem:[#allocation7 + $0x2c] ss:$16 sps:$4 sm:$0xff]   ;;  %v2968_v41 = vld [vmem:[#allocation7 + $0x28] ss:$16 sps:$4 sm:$0xff]   ;;  %v2971_v44 = vld [vmem:[#allocation7 + $0x40] ss:$16 sps:$4 sm:$0xff]  }
  0x58   :  { %315 = vmatpush1.bf16.msra.mxu0 %v2922_v11  ;;  %356 = vmatpush1.bf16.msra.mxu1 %v2946_v20  ;;  %v2976_v43 = vld [vmem:[#allocation7 + $0x4c] ss:$16 sps:$4 sm:$0xff]   ;;  %v2974_v45 = vld [vmem:[#allocation7 + $0x48] ss:$16 sps:$4 sm:$0xff]   ;;  %v2979_v46 = vld [vmem:[#allocation7 + $0x64] ss:$16 sps:$4 sm:$0xff]  }
  0x59   :  { %316 = vmatprep.subr.bf16.mxu0 %v2923_v12  ;;  %357 = vmatprep.subr.bf16.mxu1 %v2947_v21  ;;  %v2982_v47 = vld [vmem:[#allocation7 + $0x6c] ss:$16 sps:$4 sm:$0xff]   ;;  %v2977_v48 = vld [vmem:[#allocation7 + $0x60] ss:$16 sps:$4 sm:$0xff]   ;;  %v2980_v49 = vld [vmem:[#allocation7 + $0x68] ss:$16 sps:$4 sm:$0xff]  }
  0x5a   :  { %v2985_v50 = vld [vmem:[#allocation7 + $0x84] ss:$16 sps:$4 sm:$0xff]   ;;  %v2988_v51 = vld [vmem:[#allocation7 + $0x8c] ss:$16 sps:$4 sm:$0xff]   ;;  %v2983_v52 = vld [vmem:[#allocation7 + $0x80] ss:$16 sps:$4 sm:$0xff]  }
  0x5b   :  { %v2986_v53 = vld [vmem:[#allocation7 + $0x88] ss:$16 sps:$4 sm:$0xff]   ;;  %v2991_v54 = vld [vmem:[#allocation7 + $0xa4] ss:$16 sps:$4 sm:$0xff]   ;;  %v2994_v55 = vld [vmem:[#allocation7 + $0xac] ss:$16 sps:$4 sm:$0xff]  }
  0x5c   :  { %317 = vmatpush1.bf16.msra.mxu0 %v2925_v16  ;;  %358 = vmatpush1.bf16.msra.mxu1 %v2949_v24  ;;  %v2989_v56 = vld [vmem:[#allocation7 + $0xa0] ss:$16 sps:$4 sm:$0xff]   ;;  %v2992_v57 = vld [vmem:[#allocation7 + $0xa8] ss:$16 sps:$4 sm:$0xff]   ;;  %v2997_v58 = vld [vmem:[#allocation7 + $0xc4] ss:$16 sps:$4 sm:$0xff]  }
  0x5d   :  { %318 = vmatprep.subr.bf16.mxu0 %v2928_v18  ;;  %359 = vmatprep.subr.bf16.mxu1 %v2950_v25  ;;  %v3000_v59 = vld [vmem:[#allocation7 + $0xcc] ss:$16 sps:$4 sm:$0xff]   ;;  %v2995_v60 = vld [vmem:[#allocation7 + $0xc0] ss:$16 sps:$4 sm:$0xff]   ;;  %v2998_v61 = vld [vmem:[#allocation7 + $0xc8] ss:$16 sps:$4 sm:$0xff]  }
  0x5e   :  { %v3003_v62 = vld [vmem:[#allocation7 + $0xe4] ss:$16 sps:$4 sm:$0xff]   ;;  %v3006_v63 = vld [vmem:[#allocation7 + $0xec] ss:$16 sps:$4 sm:$0xff]   ;;  %v3001_v0 = vld [vmem:[#allocation7 + $0xe0] ss:$16 sps:$4 sm:$0xff]  }
  0x5f   :  { %v3004_v1 = vld [vmem:[#allocation7 + $0xe8] ss:$16 sps:$4 sm:$0xff]   ;;  %v3009_v2 = vld [vmem:[#allocation7 + $0x104] ss:$16 sps:$4 sm:$0xff]   ;;  %v3012_v3 = vld [vmem:[#allocation7 + $0x10c] ss:$16 sps:$4 sm:$0xff]  }
  0x60   :  { %319 = vmatpush1.bf16.msra.mxu0 %v2931_v19  ;;  %360 = vmatpush1.bf16.msra.mxu1 %v2952_v28  ;;  %v3007_v4 = vld [vmem:[#allocation7 + $0x100] ss:$16 sps:$4 sm:$0xff]   ;;  %v3010_v5 = vld [vmem:[#allocation7 + $0x108] ss:$16 sps:$4 sm:$0xff]   ;;  %v3015_v6 = vld [vmem:[#allocation7 + $0x124] ss:$16 sps:$4 sm:$0xff]  }
  0x61   :  { %320 = vmatprep.subr.bf16.mxu0 %v2934_v22  ;;  %361 = vmatprep.subr.bf16.mxu1 %v2953_v29  ;;  %v3018_v7 = vld [vmem:[#allocation7 + $0x12c] ss:$16 sps:$4 sm:$0xff]   ;;  %v3013_v8 = vld [vmem:[#allocation7 + $0x120] ss:$16 sps:$4 sm:$0xff]   ;;  %v3016_v9 = vld [vmem:[#allocation7 + $0x128] ss:$16 sps:$4 sm:$0xff]  }
  0x62   :  { %v3021_v10 = vld [vmem:[#allocation7 + $0x144] ss:$16 sps:$4 sm:$0xff]   ;;  %v3024_v11 = vld [vmem:[#allocation7 + $0x14c] ss:$16 sps:$4 sm:$0xff]   ;;  %v3019_v12 = vld [vmem:[#allocation7 + $0x140] ss:$16 sps:$4 sm:$0xff]  }
  0x63   :  { %v3022_v13 = vld [vmem:[#allocation7 + $0x148] ss:$16 sps:$4 sm:$0xff]   ;;  %v3027_v14 = vld [vmem:[#allocation7 + $0x164] ss:$16 sps:$4 sm:$0xff]   ;;  %v3030_v15 = vld [vmem:[#allocation7 + $0x16c] ss:$16 sps:$4 sm:$0xff]  }
  0x64   :  { %321 = vmatpush1.bf16.msra.mxu0 %v2937_v23  ;;  %362 = vmatpush1.bf16.msra.mxu1 %v2955_v31  ;;  %v3025_v16 = vld [vmem:[#allocation7 + $0x160] ss:$16 sps:$4 sm:$0xff]   ;;  %v3028_v17 = vld [vmem:[#allocation7 + $0x168] ss:$16 sps:$4 sm:$0xff]   ;;  %v3033_v18 = vld [vmem:[#allocation7 + $0x184] ss:$16 sps:$4 sm:$0xff]  }
  0x65   :  { %322 = vmatprep.subr.bf16.mxu0 %v2940_v26  ;;  %363 = vmatprep.subr.bf16.mxu1 %v2956_v33  ;;  %v3036_v19 = vld [vmem:[#allocation7 + $0x18c] ss:$16 sps:$4 sm:$0xff]   ;;  %v3031_v20 = vld [vmem:[#allocation7 + $0x180] ss:$16 sps:$4 sm:$0xff]   ;;  %v3034_v21 = vld [vmem:[#allocation7 + $0x188] ss:$16 sps:$4 sm:$0xff]  }
  0x66   :  { %v3039_v22 = vld [vmem:[#allocation7 + $0x1a4] ss:$16 sps:$4 sm:$0xff]   ;;  %v3042_v23 = vld [vmem:[#allocation7 + $0x1ac] ss:$16 sps:$4 sm:$0xff]   ;;  %v3037_v24 = vld [vmem:[#allocation7 + $0x1a0] ss:$16 sps:$4 sm:$0xff]  }
  0x67   :  { %v3040_v25 = vld [vmem:[#allocation7 + $0x1a8] ss:$16 sps:$4 sm:$0xff]   ;;  %v3045_v26 = vld [vmem:[#allocation7 + $0x1c4] ss:$16 sps:$4 sm:$0xff]   ;;  %v3043_v28 = vld [vmem:[#allocation7 + $0x1c0] ss:$16 sps:$4 sm:$0xff]  }
  0x68   :  { %323 = vmatpush1.bf16.msra.mxu0 %v2943_v27  ;;  %364 = vmatpush1.bf16.msra.mxu1 %v2958_v36  ;;  %v3048_v27 = vld [vmem:[#allocation7 + $0x1cc] ss:$16 sps:$4 sm:$0xff]   ;;  %v3046_v29 = vld [vmem:[#allocation7 + $0x1c8] ss:$16 sps:$4 sm:$0xff]   ;;  %v128_v36 = vlaneseq  ;;  %s2580_s0 = sshll.u32 %s3484_s17, 4  ;;  %s2581_s0 = int_to_ptr.vmem [resolvable:$true] %s2580_s0 }
  0x69   :  { %1316 = vmatprep.subr.bf16.mxu0 %v2961_v30  ;;  %1398 = vmatprep.subr.bf16.mxu1 %v2964_v37  ;;  %v3051_v30 = vld [vmem:[#allocation7 + $0x1e4] ss:$16 sps:$4 sm:$0xff]   ;;  %v3054_v31 = vld [vmem:[#allocation7 + $0x1ec] ss:$16 sps:$4 sm:$0xff]   ;;  %v3052_v33 = vld [vmem:[#allocation7 + $0x1e8] ss:$16 sps:$4 sm:$0xff]   ;;  %p3452_p5 = scmp.lt.s32.totalorder %s2581_s0, %s2581_s0 }
  0x6a   :  { %v129_v37 = vshrl.u32 %v128_v36, 7 }
  0x6b   :  { %341 = vmatmul.mubr.bf16.vlgmr.msra.gmra.mrb[0].mxu0 %v93_v32  ;;  %382 = vmatmul.mubr.bf16.vlgmr.msra.gmra.mrb[0].mxu1 %v93_v32  ;;  %v3049_v32 = vld [vmem:[#allocation7 + $0x1e0] ss:$16 sps:$4 sm:$0xff]  }
  0x6c   :  { %1317 = vmatpush1.bf16.msra.mxu0 %v2959_v34  ;;  %1399 = vmatpush1.bf16.msra.mxu1 %v2962_v39  ;;  %v3057_v34 = vld [vmem:[#allocation7 + $0x204] ss:$16 sps:$4 sm:$0xff]   ;;  %v126_v39 = vld [vmem:[%s3679_s2] sm:$0xf] }
  0x6d   :  { %1318 = vmatprep.subr.bf16.mxu0 %v2967_v35  ;;  %1400 = vmatprep.subr.bf16.mxu1 %v2970_v40  ;;  %v3060_v35 = vld [vmem:[#allocation7 + $0x20c] ss:$16 sps:$4 sm:$0xff]   ;;  %v3607_v40 = vsub.s32 1, %v129_v37 }
  0x70   :  { %1319 = vmatpush1.bf16.msra.mxu0 %v2965_v38  ;;  %1401 = vmatpush1.bf16.msra.mxu1 %v2968_v41  ;;  %v3602_v38 = vsub.s32 0, %v129_v37 }
  0x71   :  { %1320 = vmatprep.subr.bf16.mxu0 %v2973_v42  ;;  %1402 = vmatprep.subr.bf16.mxu1 %v2976_v43  ;;  %v135_v42 = vrot.slane %v126_v39, %v3607_v40 }
  0x72   :  { %v131_v41 = vrot.slane %v126_v39, %v3602_v38 }
  0x74   :  { %1321 = vmatpush1.bf16.msra.mxu0 %v2971_v44  ;;  %1403 = vmatpush1.bf16.msra.mxu1 %v2974_v45  ;;  %v3611_v44 = vsub.s32 2, %v129_v37 }
  0x75   :  { %1322 = vmatprep.subr.bf16.mxu0 %v2979_v46  ;;  %1404 = vmatprep.subr.bf16.mxu1 %v2982_v47  ;;  %v3613_v47 = vsub.s32 3, %v129_v37 }
  0x78   :  { %1323 = vmatpush1.bf16.msra.mxu0 %v2977_v48  ;;  %1405 = vmatpush1.bf16.msra.mxu1 %v2980_v49 }
  0x79   :  { %1324 = vmatprep.subr.bf16.mxu0 %v2985_v50  ;;  %1406 = vmatprep.subr.bf16.mxu1 %v2988_v51 }
  0x7c   :  { %1325 = vmatpush1.bf16.msra.mxu0 %v2983_v52  ;;  %1407 = vmatpush1.bf16.msra.mxu1 %v2986_v53  ;;  %v139_v53 = vrot.slane %v126_v39, %v3611_v44 }
  0x7d   :  { %1326 = vmatprep.subr.bf16.mxu0 %v2991_v54  ;;  %1408 = vmatprep.subr.bf16.mxu1 %v2994_v55  ;;  %v143_v55 = vrot.slane %v126_v39, %v3613_v47 }
  0x80   :  { %1327 = vmatpush1.bf16.msra.mxu0 %v2989_v56  ;;  %1409 = vmatpush1.bf16.msra.mxu1 %v2992_v57 }
  0x81   :  { %1328 = vmatprep.subr.bf16.mxu0 %v2997_v58  ;;  %1410 = vmatprep.subr.bf16.mxu1 %v3000_v59 }
  0x84   :  { %1329 = vmatpush1.bf16.msra.mxu0 %v2995_v60  ;;  %1411 = vmatpush1.bf16.msra.mxu1 %v2998_v61 }
  0x85   :  { %1330 = vmatprep.subr.bf16.mxu0 %v3003_v62  ;;  %1412 = vmatprep.subr.bf16.mxu1 %v3006_v63 }
  0x88   :  { %1331 = vmatpush1.bf16.msra.mxu0 %v3001_v0  ;;  %1413 = vmatpush1.bf16.msra.mxu1 %v3004_v1 }
  0x89   :  { %1332 = vmatprep.subr.bf16.mxu0 %v3009_v2  ;;  %1414 = vmatprep.subr.bf16.mxu1 %v3012_v3 }
  0x8c   :  { %1333 = vmatpush1.bf16.msra.mxu0 %v3007_v4  ;;  %1415 = vmatpush1.bf16.msra.mxu1 %v3010_v5 }
  0x8d   :  { %1334 = vmatprep.subr.bf16.mxu0 %v3015_v6  ;;  %1416 = vmatprep.subr.bf16.mxu1 %v3018_v7 }
  0x90   :  { %1335 = vmatpush1.bf16.msra.mxu0 %v3013_v8  ;;  %1417 = vmatpush1.bf16.msra.mxu1 %v3016_v9 }
  0x91   :  { %1336 = vmatprep.subr.bf16.mxu0 %v3021_v10  ;;  %1418 = vmatprep.subr.bf16.mxu1 %v3024_v11 }
  0x94   :  { %1337 = vmatpush1.bf16.msra.mxu0 %v3019_v12  ;;  %1419 = vmatpush1.bf16.msra.mxu1 %v3022_v13 }
  0x95   :  { %1338 = vmatprep.subr.bf16.mxu0 %v3027_v14  ;;  %1420 = vmatprep.subr.bf16.mxu1 %v3030_v15 }
  0x98   :  { %1339 = vmatpush1.bf16.msra.mxu0 %v3025_v16  ;;  %1421 = vmatpush1.bf16.msra.mxu1 %v3028_v17 }
  0x99   :  { %1340 = vmatprep.subr.bf16.mxu0 %v3033_v18  ;;  %1422 = vmatprep.subr.bf16.mxu1 %v3036_v19 }
  0x9c   :  { %1341 = vmatpush1.bf16.msra.mxu0 %v3031_v20  ;;  %1423 = vmatpush1.bf16.msra.mxu1 %v3034_v21 }
  0x9d   :  { %1342 = vmatprep.subr.bf16.mxu0 %v3039_v22  ;;  %1424 = vmatprep.subr.bf16.mxu1 %v3042_v23 }
  0xa0   :  { %1343 = vmatpush1.bf16.msra.mxu0 %v3037_v24  ;;  %1425 = vmatpush1.bf16.msra.mxu1 %v3040_v25 }
  0xa1   :  { %1344 = vmatprep.subr.bf16.mxu0 %v3045_v26  ;;  %1426 = vmatprep.subr.bf16.mxu1 %v3048_v27 }
  0xa4   :  { %1345 = vmatpush1.bf16.msra.mxu0 %v3043_v28  ;;  %1427 = vmatpush1.bf16.msra.mxu1 %v3046_v29 }
  0xa5   :  { %1346 = vmatprep.subr.bf16.mxu0 %v3051_v30  ;;  %1428 = vmatprep.subr.bf16.mxu1 %v3054_v31 }
  0xa8   :  { %1347 = vmatpush1.bf16.msra.mxu0 %v3049_v32  ;;  %1429 = vmatpush1.bf16.msra.mxu1 %v3052_v33 }
  0xa9   :  { %1357 = vmatprep.subr.bf16.mxu0 %v3057_v34  ;;  %1439 = vmatprep.subr.bf16.mxu1 %v3060_v35 }
 0x13e   :  { %v342_v43 = vpop.f32.mrb[0].mxu0  ;;  %v383_v58 = vpop.f32.mrb[0].mxu1 }
 0x13f   :  { %v343_v45 = vadd.f32 %v342_v43, %v131_v41  ;;  %v344_v46 = vpop.f32.mrb[1].mxu0  ;;  %v384_v60 = vadd.f32 %v383_v58, %v139_v53  ;;  %v385_v61 = vpop.f32.mrb[1].mxu1 }
 0x140   :  { %v345_v48 = vadd.f32 %v344_v46, %v135_v42  ;;  %v346_v49 = vpop.f32.mrb[2].mxu0  ;;  %v386_v63 = vadd.f32 %v385_v61, %v143_v55  ;;  %v387_v0 = vpop.f32.mrb[2].mxu1 }
 0x141   :  { %v392_v50 = vrot.slane %v343_v45, 4  ;;  %v347_v51 = vpop.f32.mrb[3].mxu0  ;;  %v404_v2 = vrot.slane %v384_v60, 4  ;;  %v388_v3 = vpop.f32.mrb[3].mxu1 }
 0x142   :  { %v398_v52 = vrot.slane %v345_v48, 4  ;;  %v410_v5 = vrot.slane %v386_v63, 4 }
 0x143   :  { %v393_v54 = vadd.f32 %v392_v50, %v343_v45  ;;  %v405_v7 = vadd.f32 %v404_v2, %v384_v60  ;;  %v390_v2 = vld [vmem:[%s3680_s3] sm:$0xf] }
 0x144   :  { %v399_v56 = vadd.f32 %v398_v52, %v345_v48  ;;  %v411_v9 = vadd.f32 %v410_v5, %v386_v63  ;;  %v472_v5 = vrot.slane %v390_v2, %v3602_v38 }
 0x145   :  { %v394_v57 = vrot.slane %v393_v54, 2  ;;  %v406_v11 = vrot.slane %v405_v7, 2 }
 0x146   :  { %v400_v59 = vrot.slane %v399_v56, 2  ;;  %v412_v13 = vrot.slane %v411_v9, 2 }
 0x147   :  { %v395_v62 = vadd.f32 %v394_v57, %v393_v54  ;;  %v407_v15 = vadd.f32 %v406_v11, %v405_v7  ;;  %v476_v7 = vrot.slane %v390_v2, %v3607_v40 }
 0x148   :  { %v401_v1 = vadd.f32 %v400_v59, %v399_v56  ;;  %v413_v17 = vadd.f32 %v412_v13, %v411_v9 }
 0x149   :  { %v396_v4 = vrot.slane %v395_v62, 1  ;;  %v408_v19 = vrot.slane %v407_v15, 1 }
 0x14a   :  { %v402_v6 = vrot.slane %v401_v1, 1  ;;  %v414_v21 = vrot.slane %v413_v17, 1 }
 0x14b   :  { %v397_v8 = vadd.f32 %v396_v4, %v395_v62  ;;  %v409_v23 = vadd.f32 %v408_v19, %v407_v15  ;;  %v391_v4 = vld [vmem:[%s3681_s4] sm:$0xf] }
 0x14c   :  { %v403_v10 = vadd.f32 %v402_v6, %v401_v1  ;;  %v415_v25 = vadd.f32 %v414_v21, %v413_v17  ;;  %v480_v17 = vrot.slane %v390_v2, %v3611_v44 }
 0x14d   :  { %v416_v12 = vmul.f32 0.125, %v397_v8  ;;  %v418_v27 = vmul.f32 0.125, %v409_v23 }
 0x14e   :  { %v417_v14 = vmul.f32 0.125, %v403_v10  ;;  %v419_v29 = vmul.f32 0.125, %v415_v25  ;;  %v497_v10 = vrot.slane %v391_v4, %v3602_v38 }
 0x14f   :  { %v420_v16 = vsub.f32 %v343_v45, %v416_v12  ;;  %v422_v31 = vsub.f32 %v384_v60, %v418_v27  ;;  %v501_v12 = vrot.slane %v391_v4, %v3607_v40 }
 0x150   :  { %v421_v18 = vsub.f32 %v345_v48, %v417_v14  ;;  %v423_v33 = vsub.f32 %v386_v63, %v419_v29  ;;  %v3055_v29 = vld [vmem:[#allocation7 + $0x200] ss:$16 sps:$4 sm:$0xff]  }
 0x151   :  { %v424_v20 = vmul.f32 %v420_v16, %v420_v16  ;;  %v426_v35 = vmul.f32 %v422_v31, %v422_v31 }
 0x152   :  { %v425_v22 = vmul.f32 %v421_v18, %v421_v18  ;;  %v427_v37 = vmul.f32 %v423_v33, %v423_v33 }
 0x153   :  { %v428_v24 = vrot.slane %v424_v20, 4  ;;  %v440_v41 = vrot.slane %v426_v35, 4 }
 0x154   :  { %v434_v26 = vrot.slane %v425_v22, 4  ;;  %v446_v43 = vrot.slane %v427_v37, 4 }
 0x155   :  { %v429_v28 = vadd.f32 %v428_v24, %v424_v20  ;;  %v441_v46 = vadd.f32 %v440_v41, %v426_v35  ;;  %v3066_v35 = vld [vmem:[#allocation7 + $0x22c] ss:$16 sps:$4 sm:$0xff]   ;;  %v3069_v41 = vld [vmem:[#allocation7 + $0x244] ss:$16 sps:$4 sm:$0xff]  }
 0x156   :  { %v435_v30 = vadd.f32 %v434_v26, %v425_v22  ;;  %v447_v49 = vadd.f32 %v446_v43, %v427_v37  ;;  %v484_v22 = vrot.slane %v390_v2, %v3613_v47  ;;  %v3102_v2 = vld [vmem:[#allocation7 + $0x2ec] ss:$16 sps:$4 sm:$0xff]  }
 0x157   :  { %v430_v32 = vrot.slane %v429_v28, 2  ;;  %v442_v51 = vrot.slane %v441_v46, 2 }
 0x158   :  { %v436_v34 = vrot.slane %v435_v30, 2  ;;  %v448_v53 = vrot.slane %v447_v49, 2 }
 0x159   :  { %v431_v36 = vadd.f32 %v430_v32, %v429_v28  ;;  %v443_v55 = vadd.f32 %v442_v51, %v441_v46  ;;  %v3067_v46 = vld [vmem:[#allocation7 + $0x240] ss:$16 sps:$4 sm:$0xff]  }
 0x15a   :  { %v437_v39 = vadd.f32 %v436_v34, %v435_v30  ;;  %v449_v57 = vadd.f32 %v448_v53, %v447_v49  ;;  %v3058_v30 = vld [vmem:[#allocation7 + $0x208] ss:$16 sps:$4 sm:$0xff]   ;;  %v3063_v34 = vld [vmem:[#allocation7 + $0x224] ss:$16 sps:$4 sm:$0xff]   ;;  %v3073_v51 = vld [vmem:[#allocation7 + $0x260] ss:$16 sps:$4 sm:$0xff]  }
 0x15b   :  { %v432_v42 = vrot.slane %v431_v36, 1  ;;  %v444_v59 = vrot.slane %v443_v55, 1  ;;  %v3075_v49 = vld [vmem:[#allocation7 + $0x264] ss:$16 sps:$4 sm:$0xff]  }
 0x15c   :  { %v438_v45 = vrot.slane %v437_v39, 1  ;;  %v450_v60 = vrot.slane %v449_v57, 1  ;;  %v3081_v53 = vld [vmem:[#allocation7 + $0x284] ss:$16 sps:$4 sm:$0xff]  }
 0x15d   :  { %v433_v48 = vadd.f32 %v432_v42, %v431_v36  ;;  %v445_v61 = vadd.f32 %v444_v59, %v443_v55  ;;  %v3072_v42 = vld [vmem:[#allocation7 + $0x24c] ss:$16 sps:$4 sm:$0xff]   ;;  %v3079_v55 = vld [vmem:[#allocation7 + $0x280] ss:$16 sps:$4 sm:$0xff]  }
 0x15e   :  { %v439_v50 = vadd.f32 %v438_v45, %v437_v39  ;;  %v451_v62 = vadd.f32 %v450_v60, %v449_v57  ;;  %v3064_v39 = vld [vmem:[#allocation7 + $0x228] ss:$16 sps:$4 sm:$0xff]   ;;  %v3087_v57 = vld [vmem:[#allocation7 + $0x2a4] ss:$16 sps:$4 sm:$0xff]   ;;  %v3085_v59 = vld [vmem:[#allocation7 + $0x2a0] ss:$16 sps:$4 sm:$0xff]  }
 0x15f   :  { %v452_v52 = vmul.f32 0.125, %v433_v48  ;;  %v454_v63 = vmul.f32 0.125, %v445_v61  ;;  %v3070_v48 = vld [vmem:[#allocation7 + $0x248] ss:$16 sps:$4 sm:$0xff]   ;;  %v3093_v61 = vld [vmem:[#allocation7 + $0x2c4] ss:$16 sps:$4 sm:$0xff]  }
 0x160   :  { %v453_v54 = vmul.f32 0.125, %v439_v50  ;;  %v455_v0 = vmul.f32 0.125, %v451_v62  ;;  %v3078_v50 = vld [vmem:[#allocation7 + $0x26c] ss:$16 sps:$4 sm:$0xff]   ;;  %v3088_v60 = vld [vmem:[#allocation7 + $0x2a8] ss:$16 sps:$4 sm:$0xff]  }
 0x161   :  { %v456_v56 = vadd.f32 1e-05, %v452_v52  ;;  %v458_v1 = vadd.f32 1e-05, %v454_v63  ;;  %v3076_v52 = vld [vmem:[#allocation7 + $0x268] ss:$16 sps:$4 sm:$0xff]  }
 0x162   :  { %v457_v58 = vadd.f32 1e-05, %v453_v54  ;;  %v459_v3 = vadd.f32 1e-05, %v455_v0  ;;  %v3084_v54 = vld [vmem:[#allocation7 + $0x28c] ss:$16 sps:$4 sm:$0xff]  }
 0x163   :  { %3343 = vrsqrt.f32 %v456_v56  ;;  %v3082_v56 = vld [vmem:[#allocation7 + $0x288] ss:$16 sps:$4 sm:$0xff]   ;;  %v3096_v62 = vld [vmem:[#allocation7 + $0x2cc] ss:$16 sps:$4 sm:$0xff]   ;;  %v3091_v63 = vld [vmem:[#allocation7 + $0x2c0] ss:$16 sps:$4 sm:$0xff]  }
 0x164   :  { %3345 = vrsqrt.f32 %v457_v58  ;;  %v3090_v58 = vld [vmem:[#allocation7 + $0x2ac] ss:$16 sps:$4 sm:$0xff]   ;;  %v3094_v0 = vld [vmem:[#allocation7 + $0x2c8] ss:$16 sps:$4 sm:$0xff]  }
 0x165   :  { %3347 = vrsqrt.f32 %v458_v1  ;;  %v3099_v1 = vld [vmem:[#allocation7 + $0x2e4] ss:$16 sps:$4 sm:$0xff]  }
 0x166   :  { %3349 = vrsqrt.f32 %v459_v3  ;;  %v3097_v3 = vld [vmem:[#allocation7 + $0x2e0] ss:$16 sps:$4 sm:$0xff]  }
 0x16d   :  { %v3344_v6 = vpop.eup %3343 }
 0x16e   :  { %v3346_v8 = vpop.eup %3345  ;;  %v464_v9 = vmul.f32 %v3344_v6, %v420_v16  ;;  %v505_v16 = vrot.slane %v391_v4, %v3611_v44  ;;  %v3108_v6 = vld [vmem:[#allocation7 + $0x30c] ss:$16 sps:$4 sm:$0xff]  }
 0x16f   :  { %v465_v11 = vmul.f32 %v3346_v8, %v421_v18  ;;  %v3348_v20 = vpop.eup %3347  ;;  %v509_v18 = vrot.slane %v391_v4, %v3613_v47  ;;  %v3100_v4 = vld [vmem:[#allocation7 + $0x2e8] ss:$16 sps:$4 sm:$0xff]  }
 0x170   :  { %v489_v13 = vmul.f32 %v472_v5, %v464_v9  ;;  %v3350_v23 = vpop.eup %3349  ;;  %v466_v24 = vmul.f32 %v3348_v20, %v422_v31  ;;  %v3105_v5 = vld [vmem:[#allocation7 + $0x304] ss:$16 sps:$4 sm:$0xff]   ;;  %v3106_v8 = vld [vmem:[#allocation7 + $0x308] ss:$16 sps:$4 sm:$0xff]   ;;  %v3126_v20 = vld [vmem:[#allocation7 + $0x36c] ss:$16 sps:$4 sm:$0xff]  }
 0x171   :  { %v490_v14 = vmul.f32 %v476_v7, %v465_v11  ;;  %v467_v26 = vmul.f32 %v3350_v23, %v423_v33  ;;  %v3061_v33 = vld [vmem:[#allocation7 + $0x220] ss:$16 sps:$4 sm:$0xff]   ;;  %v3111_v9 = vld [vmem:[#allocation7 + $0x324] ss:$16 sps:$4 sm:$0xff]  }
 0x172   :  { %v514_v15 = vadd.f32 %v497_v10, %v489_v13  ;;  %v491_v27 = vmul.f32 %v480_v17, %v466_v24  ;;  %v3103_v7 = vld [vmem:[#allocation7 + $0x300] ss:$16 sps:$4 sm:$0xff]   ;;  %v3114_v10 = vld [vmem:[#allocation7 + $0x32c] ss:$16 sps:$4 sm:$0xff]   ;;  %v3117_v13 = vld [vmem:[#allocation7 + $0x344] ss:$16 sps:$4 sm:$0xff]  }
 0x173   :  { %v515_v19 = vadd.f32 %v501_v12, %v490_v14  ;;  %v492_v36 = vmul.f32 %v484_v22, %v467_v26  ;;  %v3109_v11 = vld [vmem:[#allocation7 + $0x320] ss:$16 sps:$4 sm:$0xff]   ;;  %v3112_v12 = vld [vmem:[#allocation7 + $0x328] ss:$16 sps:$4 sm:$0xff]   ;;  %v3120_v14 = vld [vmem:[#allocation7 + $0x34c] ss:$16 sps:$4 sm:$0xff]  }
 0x174   :  { %v518_v21 = vmax.f32 %v514_v15, 0.0  ;;  %v3631_v37 = vadd.f32 %v505_v16, %v491_v27  ;;  %v3115_v15 = vld [vmem:[#allocation7 + $0x340] ss:$16 sps:$4 sm:$0xff]   ;;  %v3118_v17 = vld [vmem:[#allocation7 + $0x348] ss:$16 sps:$4 sm:$0xff]  }
 0x175   :  { %v519_v25 = vmax.f32 %v515_v19, 0.0  ;;  %v517_v31 = vadd.f32 %v509_v18, %v492_v36  ;;  %v3123_v19 = vld [vmem:[#allocation7 + $0x364] ss:$16 sps:$4 sm:$0xff]   ;;  %v3124_v22 = vld [vmem:[#allocation7 + $0x368] ss:$16 sps:$4 sm:$0xff]  }
 0x176   :  { %v522_v32 = vpack.c.bf16 %v518_v21, %v518_v21  ;;  %v3121_v21 = vld [vmem:[#allocation7 + $0x360] ss:$16 sps:$4 sm:$0xff]   ;;  %v3129_v23 = vld [vmem:[#allocation7 + $0x384] ss:$16 sps:$4 sm:$0xff]   ;;  %v3132_v24 = vld [vmem:[#allocation7 + $0x38c] ss:$16 sps:$4 sm:$0xff]  }
 0x177   :  { %v523_v28 = vpack.c.bf16 %v519_v25, %v519_v25  ;;  %v521_v43 = vmax.f32 %v517_v31, 0.0  ;;  %v3127_v25 = vld [vmem:[#allocation7 + $0x380] ss:$16 sps:$4 sm:$0xff]   ;;  %v3130_v16 = vld [vmem:[#allocation7 + $0x388] ss:$16 sps:$4 sm:$0xff]  }
 0x178   :  { %v3135_v26 = vld [vmem:[#allocation7 + $0x3a4] ss:$16 sps:$4 sm:$0xff]   ;;  %v3138_v18 = vld [vmem:[#allocation7 + $0x3ac] ss:$16 sps:$4 sm:$0xff]   ;;  %v3133_v27 = vld [vmem:[#allocation7 + $0x3a0] ss:$16 sps:$4 sm:$0xff]  }
 0x179   :  { %1348 = vmatprep.mubr.bf16.mxu0 %v523_v28  ;;  %1430 = vmatprep.mubr.bf16.mxu1 %v523_v28  ;;  %v525_v45 = vpack.c.bf16 %v521_v43, %v521_v43  ;;  %v3136_v28 = vld [vmem:[#allocation7 + $0x3a8] ss:$16 sps:$4 sm:$0xff]   ;;  %v3150_v36 = vld [vmem:[#allocation7 + $0x3ec] ss:$16 sps:$4 sm:$0xff]   ;;  %v3145_v31 = vld [vmem:[#allocation7 + $0x3e0] ss:$16 sps:$4 sm:$0xff]  }
 0x17a   :  { %1349 = vmatmul.mubr.bf16.vlgmr.msra.gmra.mrb[4].mxu0 %v522_v32  ;;  %1431 = vmatmul.mubr.bf16.vlgmr.msra.gmra.mrb[4].mxu1 %v522_v32  ;;  %v3139_v32 = vld [vmem:[#allocation7 + $0x3c0] ss:$16 sps:$4 sm:$0xff]  }
 0x17b   :  { %1358 = vmatpush1.bf16.msra.mxu0 %v3055_v29  ;;  %1440 = vmatpush1.bf16.msra.mxu1 %v3058_v30  ;;  %v3141_v29 = vld [vmem:[#allocation7 + $0x3c4] ss:$16 sps:$4 sm:$0xff]   ;;  %v3144_v30 = vld [vmem:[#allocation7 + $0x3cc] ss:$16 sps:$4 sm:$0xff]   ;;  %v3151_v43 = vld [vmem:[#allocation8] ss:$16 sps:$4 sm:$0xff]  }
 0x17c   :  { %1359 = vmatprep.subr.bf16.mxu0 %v3063_v34  ;;  %1441 = vmatprep.subr.bf16.mxu1 %v3066_v35  ;;  %v3142_v34 = vld [vmem:[#allocation7 + $0x3c8] ss:$16 sps:$4 sm:$0xff]   ;;  %v3147_v35 = vld [vmem:[#allocation7 + $0x3e4] ss:$16 sps:$4 sm:$0xff]  }
 0x17d   :  { %1389 = vmatprep.mubr.bf16.mxu0 %v525_v45  ;;  %1471 = vmatprep.mubr.bf16.mxu1 %v525_v45  ;;  %v3154_v45 = vld [vmem:[#allocation8 + $0x8] ss:$16 sps:$4 sm:$0xff]  }
 0x17f   :  { %1360 = vmatpush1.bf16.msra.mxu0 %v3061_v33  ;;  %1442 = vmatpush1.bf16.msra.mxu1 %v3064_v39  ;;  %v3148_v33 = vld [vmem:[#allocation7 + $0x3e8] ss:$16 sps:$4 sm:$0xff]   ;;  %v520_v39 = vmax.f32 %v3631_v37, 0.0  ;;  %v3165_v37 = vld [vmem:[#allocation8 + $0x44] ss:$16 sps:$4 sm:$0xff]  }
 0x180   :  { %1361 = vmatprep.subr.bf16.mxu0 %v3069_v41  ;;  %1443 = vmatprep.subr.bf16.mxu1 %v3072_v42  ;;  %v3153_v41 = vld [vmem:[#allocation8 + $0x4] ss:$16 sps:$4 sm:$0xff]   ;;  %v3156_v42 = vld [vmem:[#allocation8 + $0xc] ss:$16 sps:$4 sm:$0xff]  }
 0x183   :  { %1362 = vmatpush1.bf16.msra.mxu0 %v3067_v46  ;;  %1444 = vmatpush1.bf16.msra.mxu1 %v3070_v48  ;;  %v524_v46 = vpack.c.bf16 %v520_v39, %v520_v39  ;;  %v3159_v48 = vld [vmem:[#allocation8 + $0x24] ss:$16 sps:$4 sm:$0xff]   ;;  %v3238_v39 = vld [vmem:[#allocation8 + $0x1c8] ss:$16 sps:$4 sm:$0xff]  }
 0x184   :  { %1363 = vmatprep.subr.bf16.mxu0 %v3075_v49  ;;  %1445 = vmatprep.subr.bf16.mxu1 %v3078_v50  ;;  %v3162_v49 = vld [vmem:[#allocation8 + $0x2c] ss:$16 sps:$4 sm:$0xff]   ;;  %v3157_v50 = vld [vmem:[#allocation8 + $0x20] ss:$16 sps:$4 sm:$0xff]  }
 0x187   :  { %1364 = vmatpush1.bf16.msra.mxu0 %v3073_v51  ;;  %1446 = vmatpush1.bf16.msra.mxu1 %v3076_v52  ;;  %v3160_v51 = vld [vmem:[#allocation8 + $0x28] ss:$16 sps:$4 sm:$0xff]   ;;  %v3168_v52 = vld [vmem:[#allocation8 + $0x4c] ss:$16 sps:$4 sm:$0xff]  }
 0x188   :  { %1365 = vmatprep.subr.bf16.mxu0 %v3081_v53  ;;  %1447 = vmatprep.subr.bf16.mxu1 %v3084_v54  ;;  %v3163_v53 = vld [vmem:[#allocation8 + $0x40] ss:$16 sps:$4 sm:$0xff]   ;;  %v3166_v54 = vld [vmem:[#allocation8 + $0x48] ss:$16 sps:$4 sm:$0xff]  }
 0x18b   :  { %1366 = vmatpush1.bf16.msra.mxu0 %v3079_v55  ;;  %1448 = vmatpush1.bf16.msra.mxu1 %v3082_v56  ;;  %v3171_v55 = vld [vmem:[#allocation8 + $0x64] ss:$16 sps:$4 sm:$0xff]   ;;  %v3174_v56 = vld [vmem:[#allocation8 + $0x6c] ss:$16 sps:$4 sm:$0xff]  }
 0x18c   :  { %1367 = vmatprep.subr.bf16.mxu0 %v3087_v57  ;;  %1449 = vmatprep.subr.bf16.mxu1 %v3090_v58  ;;  %v3169_v57 = vld [vmem:[#allocation8 + $0x60] ss:$16 sps:$4 sm:$0xff]   ;;  %v3172_v58 = vld [vmem:[#allocation8 + $0x68] ss:$16 sps:$4 sm:$0xff]  }
 0x18f   :  { %1368 = vmatpush1.bf16.msra.mxu0 %v3085_v59  ;;  %1450 = vmatpush1.bf16.msra.mxu1 %v3088_v60  ;;  %v3177_v59 = vld [vmem:[#allocation8 + $0x84] ss:$16 sps:$4 sm:$0xff]   ;;  %v3180_v60 = vld [vmem:[#allocation8 + $0x8c] ss:$16 sps:$4 sm:$0xff]  }
 0x190   :  { %1369 = vmatprep.subr.bf16.mxu0 %v3093_v61  ;;  %1451 = vmatprep.subr.bf16.mxu1 %v3096_v62  ;;  %v3175_v61 = vld [vmem:[#allocation8 + $0x80] ss:$16 sps:$4 sm:$0xff]   ;;  %v3178_v62 = vld [vmem:[#allocation8 + $0x88] ss:$16 sps:$4 sm:$0xff]  }
 0x193   :  { %1370 = vmatpush1.bf16.msra.mxu0 %v3091_v63  ;;  %1452 = vmatpush1.bf16.msra.mxu1 %v3094_v0  ;;  %v3183_v63 = vld [vmem:[#allocation8 + $0xa4] ss:$16 sps:$4 sm:$0xff]   ;;  %v3186_v0 = vld [vmem:[#allocation8 + $0xac] ss:$16 sps:$4 sm:$0xff]  }
 0x194   :  { %1371 = vmatprep.subr.bf16.mxu0 %v3099_v1  ;;  %1453 = vmatprep.subr.bf16.mxu1 %v3102_v2  ;;  %v3181_v1 = vld [vmem:[#allocation8 + $0xa0] ss:$16 sps:$4 sm:$0xff]   ;;  %v3184_v2 = vld [vmem:[#allocation8 + $0xa8] ss:$16 sps:$4 sm:$0xff]  }
 0x197   :  { %1372 = vmatpush1.bf16.msra.mxu0 %v3097_v3  ;;  %1454 = vmatpush1.bf16.msra.mxu1 %v3100_v4  ;;  %v3189_v3 = vld [vmem:[#allocation8 + $0xc4] ss:$16 sps:$4 sm:$0xff]   ;;  %v3192_v4 = vld [vmem:[#allocation8 + $0xcc] ss:$16 sps:$4 sm:$0xff]  }
 0x198   :  { %1373 = vmatprep.subr.bf16.mxu0 %v3105_v5  ;;  %1455 = vmatprep.subr.bf16.mxu1 %v3108_v6  ;;  %v3187_v5 = vld [vmem:[#allocation8 + $0xc0] ss:$16 sps:$4 sm:$0xff]   ;;  %v3190_v6 = vld [vmem:[#allocation8 + $0xc8] ss:$16 sps:$4 sm:$0xff]  }
 0x19b   :  { %1374 = vmatpush1.bf16.msra.mxu0 %v3103_v7  ;;  %1456 = vmatpush1.bf16.msra.mxu1 %v3106_v8  ;;  %v3195_v7 = vld [vmem:[#allocation8 + $0xe4] ss:$16 sps:$4 sm:$0xff]   ;;  %v3198_v8 = vld [vmem:[#allocation8 + $0xec] ss:$16 sps:$4 sm:$0xff]  }
 0x19c   :  { %1375 = vmatprep.subr.bf16.mxu0 %v3111_v9  ;;  %1457 = vmatprep.subr.bf16.mxu1 %v3114_v10  ;;  %v3193_v9 = vld [vmem:[#allocation8 + $0xe0] ss:$16 sps:$4 sm:$0xff]   ;;  %v3196_v10 = vld [vmem:[#allocation8 + $0xe8] ss:$16 sps:$4 sm:$0xff]  }
 0x19f   :  { %1376 = vmatpush1.bf16.msra.mxu0 %v3109_v11  ;;  %1458 = vmatpush1.bf16.msra.mxu1 %v3112_v12  ;;  %v3201_v11 = vld [vmem:[#allocation8 + $0x104] ss:$16 sps:$4 sm:$0xff]   ;;  %v3204_v12 = vld [vmem:[#allocation8 + $0x10c] ss:$16 sps:$4 sm:$0xff]  }
 0x1a0   :  { %1377 = vmatprep.subr.bf16.mxu0 %v3117_v13  ;;  %1459 = vmatprep.subr.bf16.mxu1 %v3120_v14  ;;  %v3199_v13 = vld [vmem:[#allocation8 + $0x100] ss:$16 sps:$4 sm:$0xff]   ;;  %v3202_v14 = vld [vmem:[#allocation8 + $0x108] ss:$16 sps:$4 sm:$0xff]  }
 0x1a3   :  { %1378 = vmatpush1.bf16.msra.mxu0 %v3115_v15  ;;  %1460 = vmatpush1.bf16.msra.mxu1 %v3118_v17  ;;  %v3207_v15 = vld [vmem:[#allocation8 + $0x124] ss:$16 sps:$4 sm:$0xff]   ;;  %v3210_v17 = vld [vmem:[#allocation8 + $0x12c] ss:$16 sps:$4 sm:$0xff]  }
 0x1a4   :  { %1379 = vmatprep.subr.bf16.mxu0 %v3123_v19  ;;  %1461 = vmatprep.subr.bf16.mxu1 %v3126_v20  ;;  %v3205_v19 = vld [vmem:[#allocation8 + $0x120] ss:$16 sps:$4 sm:$0xff]   ;;  %v3208_v20 = vld [vmem:[#allocation8 + $0x128] ss:$16 sps:$4 sm:$0xff]  }
 0x1a7   :  { %1380 = vmatpush1.bf16.msra.mxu0 %v3121_v21  ;;  %1462 = vmatpush1.bf16.msra.mxu1 %v3124_v22  ;;  %v3213_v21 = vld [vmem:[#allocation8 + $0x144] ss:$16 sps:$4 sm:$0xff]   ;;  %v3216_v22 = vld [vmem:[#allocation8 + $0x14c] ss:$16 sps:$4 sm:$0xff]  }
 0x1a8   :  { %1381 = vmatprep.subr.bf16.mxu0 %v3129_v23  ;;  %1463 = vmatprep.subr.bf16.mxu1 %v3132_v24  ;;  %v3211_v23 = vld [vmem:[#allocation8 + $0x140] ss:$16 sps:$4 sm:$0xff]   ;;  %v3214_v24 = vld [vmem:[#allocation8 + $0x148] ss:$16 sps:$4 sm:$0xff]  }
 0x1ab   :  { %1382 = vmatpush1.bf16.msra.mxu0 %v3127_v25  ;;  %1464 = vmatpush1.bf16.msra.mxu1 %v3130_v16  ;;  %v3219_v25 = vld [vmem:[#allocation8 + $0x164] ss:$16 sps:$4 sm:$0xff]   ;;  %v3222_v16 = vld [vmem:[#allocation8 + $0x16c] ss:$16 sps:$4 sm:$0xff]  }
 0x1ac   :  { %1383 = vmatprep.subr.bf16.mxu0 %v3135_v26  ;;  %1465 = vmatprep.subr.bf16.mxu1 %v3138_v18  ;;  %v3217_v26 = vld [vmem:[#allocation8 + $0x160] ss:$16 sps:$4 sm:$0xff]   ;;  %v3220_v18 = vld [vmem:[#allocation8 + $0x168] ss:$16 sps:$4 sm:$0xff]  }
 0x1af   :  { %1384 = vmatpush1.bf16.msra.mxu0 %v3133_v27  ;;  %1466 = vmatpush1.bf16.msra.mxu1 %v3136_v28  ;;  %v3225_v27 = vld [vmem:[#allocation8 + $0x184] ss:$16 sps:$4 sm:$0xff]   ;;  %v3228_v28 = vld [vmem:[#allocation8 + $0x18c] ss:$16 sps:$4 sm:$0xff]  }
 0x1b0   :  { %1385 = vmatprep.subr.bf16.mxu0 %v3141_v29  ;;  %1467 = vmatprep.subr.bf16.mxu1 %v3144_v30  ;;  %v3223_v29 = vld [vmem:[#allocation8 + $0x180] ss:$16 sps:$4 sm:$0xff]   ;;  %v3226_v30 = vld [vmem:[#allocation8 + $0x188] ss:$16 sps:$4 sm:$0xff]  }
 0x1b3   :  { %1386 = vmatpush1.bf16.msra.mxu0 %v3139_v32  ;;  %1468 = vmatpush1.bf16.msra.mxu1 %v3142_v34  ;;  %v3231_v32 = vld [vmem:[#allocation8 + $0x1a4] ss:$16 sps:$4 sm:$0xff]   ;;  %v3234_v34 = vld [vmem:[#allocation8 + $0x1ac] ss:$16 sps:$4 sm:$0xff]  }
 0x1b4   :  { %1387 = vmatprep.subr.bf16.mxu0 %v3147_v35  ;;  %1469 = vmatprep.subr.bf16.mxu1 %v3150_v36  ;;  %v3229_v35 = vld [vmem:[#allocation8 + $0x1a0] ss:$16 sps:$4 sm:$0xff]   ;;  %v3232_v36 = vld [vmem:[#allocation8 + $0x1a8] ss:$16 sps:$4 sm:$0xff]  }
 0x1b7   :  { %1388 = vmatpush1.bf16.msra.mxu0 %v3145_v31  ;;  %1470 = vmatpush1.bf16.msra.mxu1 %v3148_v33  ;;  %v3235_v31 = vld [vmem:[#allocation8 + $0x1c0] ss:$16 sps:$4 sm:$0xff]   ;;  %v3237_v33 = vld [vmem:[#allocation8 + $0x1c4] ss:$16 sps:$4 sm:$0xff]  }
 0x1b8   :  { %2406 = vmatprep.subr.bf16.mxu0 %v3153_v41  ;;  %2488 = vmatprep.subr.bf16.mxu1 %v3156_v42  ;;  %v3240_v41 = vld [vmem:[#allocation8 + $0x1cc] ss:$16 sps:$4 sm:$0xff]   ;;  %v3243_v42 = vld [vmem:[#allocation8 + $0x1e4] ss:$16 sps:$4 sm:$0xff]  }
 0x1ba   :  { %1390 = vmatmul.mubr.bf16.vlgmr.msra.gmra.mrb[4].mxu0 %v524_v46  ;;  %1472 = vmatmul.mubr.bf16.vlgmr.msra.gmra.mrb[4].mxu1 %v524_v46  ;;  %v3244_v46 = vld [vmem:[#allocation8 + $0x1e8] ss:$16 sps:$4 sm:$0xff]  }
 0x1bb   :  { %2407 = vmatpush1.bf16.msra.mxu0 %v3151_v43  ;;  %2489 = vmatpush1.bf16.msra.mxu1 %v3154_v45  ;;  %v3246_v43 = vld [vmem:[#allocation8 + $0x1ec] ss:$16 sps:$4 sm:$0xff]   ;;  %v3241_v45 = vld [vmem:[#allocation8 + $0x1e0] ss:$16 sps:$4 sm:$0xff]  }
 0x1bc   :  { %2408 = vmatprep.subr.bf16.mxu0 %v3159_v48  ;;  %2490 = vmatprep.subr.bf16.mxu1 %v3162_v49  ;;  %v3249_v48 = vld [vmem:[#allocation8 + $0x204] ss:$16 sps:$4 sm:$0xff]   ;;  %v3252_v49 = vld [vmem:[#allocation8 + $0x20c] ss:$16 sps:$4 sm:$0xff]  }
 0x1bf   :  { %2409 = vmatpush1.bf16.msra.mxu0 %v3157_v50  ;;  %2491 = vmatpush1.bf16.msra.mxu1 %v3160_v51  ;;  %v654_v50 = vld [vmem:[%s3683_s6] sm:$0xf] }
 0x1c0   :  { %2410 = vmatprep.subr.bf16.mxu0 %v3165_v37  ;;  %2492 = vmatprep.subr.bf16.mxu1 %v3168_v52  ;;  %v659_v51 = vrot.slane %v654_v50, %v3602_v38  ;;  %v667_v37 = vrot.slane %v654_v50, %v3611_v44  ;;  %v663_v52 = vrot.slane %v654_v50, %v3607_v40 }
 0x1c3   :  { %2411 = vmatpush1.bf16.msra.mxu0 %v3163_v53  ;;  %2493 = vmatpush1.bf16.msra.mxu1 %v3166_v54  ;;  %v671_v53 = vrot.slane %v654_v50, %v3613_v47 }
 0x1c4   :  { %2412 = vmatprep.subr.bf16.mxu0 %v3171_v55  ;;  %2494 = vmatprep.subr.bf16.mxu1 %v3174_v56 }
 0x1c7   :  { %2413 = vmatpush1.bf16.msra.mxu0 %v3169_v57  ;;  %2495 = vmatpush1.bf16.msra.mxu1 %v3172_v58 }
 0x1c8   :  { %2414 = vmatprep.subr.bf16.mxu0 %v3177_v59  ;;  %2496 = vmatprep.subr.bf16.mxu1 %v3180_v60 }
 0x1cb   :  { %2415 = vmatpush1.bf16.msra.mxu0 %v3175_v61  ;;  %2497 = vmatpush1.bf16.msra.mxu1 %v3178_v62 }
 0x1cc   :  { %2416 = vmatprep.subr.bf16.mxu0 %v3183_v63  ;;  %2498 = vmatprep.subr.bf16.mxu1 %v3186_v0 }
 0x1cf   :  { %2417 = vmatpush1.bf16.msra.mxu0 %v3181_v1  ;;  %2499 = vmatpush1.bf16.msra.mxu1 %v3184_v2 }
 0x1d0   :  { %2418 = vmatprep.subr.bf16.mxu0 %v3189_v3  ;;  %2500 = vmatprep.subr.bf16.mxu1 %v3192_v4 }
 0x1d3   :  { %2419 = vmatpush1.bf16.msra.mxu0 %v3187_v5  ;;  %2501 = vmatpush1.bf16.msra.mxu1 %v3190_v6 }
 0x1d4   :  { %2420 = vmatprep.subr.bf16.mxu0 %v3195_v7  ;;  %2502 = vmatprep.subr.bf16.mxu1 %v3198_v8 }
 0x1d7   :  { %2421 = vmatpush1.bf16.msra.mxu0 %v3193_v9  ;;  %2503 = vmatpush1.bf16.msra.mxu1 %v3196_v10 }
 0x1d8   :  { %2422 = vmatprep.subr.bf16.mxu0 %v3201_v11  ;;  %2504 = vmatprep.subr.bf16.mxu1 %v3204_v12 }
 0x1db   :  { %2423 = vmatpush1.bf16.msra.mxu0 %v3199_v13  ;;  %2505 = vmatpush1.bf16.msra.mxu1 %v3202_v14 }
 0x1dc   :  { %2424 = vmatprep.subr.bf16.mxu0 %v3207_v15  ;;  %2506 = vmatprep.subr.bf16.mxu1 %v3210_v17 }
 0x1df   :  { %2425 = vmatpush1.bf16.msra.mxu0 %v3205_v19  ;;  %2507 = vmatpush1.bf16.msra.mxu1 %v3208_v20 }
 0x1e0   :  { %2426 = vmatprep.subr.bf16.mxu0 %v3213_v21  ;;  %2508 = vmatprep.subr.bf16.mxu1 %v3216_v22 }
 0x1e3   :  { %2427 = vmatpush1.bf16.msra.mxu0 %v3211_v23  ;;  %2509 = vmatpush1.bf16.msra.mxu1 %v3214_v24 }
 0x1e4   :  { %2428 = vmatprep.subr.bf16.mxu0 %v3219_v25  ;;  %2510 = vmatprep.subr.bf16.mxu1 %v3222_v16 }
 0x1e7   :  { %2429 = vmatpush1.bf16.msra.mxu0 %v3217_v26  ;;  %2511 = vmatpush1.bf16.msra.mxu1 %v3220_v18 }
 0x1e8   :  { %2430 = vmatprep.subr.bf16.mxu0 %v3225_v27  ;;  %2512 = vmatprep.subr.bf16.mxu1 %v3228_v28 }
 0x1eb   :  { %2431 = vmatpush1.bf16.msra.mxu0 %v3223_v29  ;;  %2513 = vmatpush1.bf16.msra.mxu1 %v3226_v30 }
 0x1ec   :  { %2432 = vmatprep.subr.bf16.mxu0 %v3231_v32  ;;  %2514 = vmatprep.subr.bf16.mxu1 %v3234_v34 }
 0x1ef   :  { %2433 = vmatpush1.bf16.msra.mxu0 %v3229_v35  ;;  %2515 = vmatpush1.bf16.msra.mxu1 %v3232_v36 }
 0x1f0   :  { %2434 = vmatprep.subr.bf16.mxu0 %v3237_v33  ;;  %2516 = vmatprep.subr.bf16.mxu1 %v3240_v41 }
 0x1f3   :  { %2435 = vmatpush1.bf16.msra.mxu0 %v3235_v31  ;;  %2517 = vmatpush1.bf16.msra.mxu1 %v3238_v39 }
 0x1f4   :  { %2436 = vmatprep.subr.bf16.mxu0 %v3243_v42  ;;  %2518 = vmatprep.subr.bf16.mxu1 %v3246_v43 }
 0x1f7   :  { %2437 = vmatpush1.bf16.msra.mxu0 %v3241_v45  ;;  %2519 = vmatpush1.bf16.msra.mxu1 %v3244_v46 }
 0x1f8   :  { %2447 = vmatprep.subr.bf16.mxu0 %v3249_v48  ;;  %2529 = vmatprep.subr.bf16.mxu1 %v3252_v49 }
 0x28d   :  { %v1391_v54 = vpop.f32.mrb[4].mxu0  ;;  %v1473_v55 = vpop.f32.mrb[4].mxu1 }
 0x28e   :  { %v2879_v56 = vadd.f32 %v1391_v54, %v659_v51  ;;  %v2881_v57 = vadd.f32 %v1473_v55, %v667_v37  ;;  %v1393_v58 = vpop.f32.mrb[5].mxu0  ;;  %v1475_v59 = vpop.f32.mrb[5].mxu1 }
 0x28f   :  { %v2880_v60 = vadd.f32 %v1393_v58, %v663_v52  ;;  %v2882_v61 = vadd.f32 %v1475_v59, %v671_v53  ;;  %v1395_v62 = vpop.f32.mrb[6].mxu0  ;;  %v1477_v63 = vpop.f32.mrb[6].mxu1 }
 0x290   :  { %v1482_v0 = vrot.slane %v2879_v56, 4  ;;  %v1494_v1 = vrot.slane %v2881_v57, 4  ;;  %v1396_v2 = vpop.f32.mrb[7].mxu0  ;;  %v1478_v3 = vpop.f32.mrb[7].mxu1 }
 0x291   :  { %v1488_v4 = vrot.slane %v2880_v60, 4  ;;  %v1500_v5 = vrot.slane %v2882_v61, 4 }
 0x292   :  { %v1483_v6 = vadd.f32 %v2879_v56, %v1482_v0  ;;  %v1495_v7 = vadd.f32 %v2881_v57, %v1494_v1 }
 0x293   :  { %v1489_v8 = vadd.f32 %v2880_v60, %v1488_v4  ;;  %v1501_v9 = vadd.f32 %v2882_v61, %v1500_v5 }
 0x294   :  { %v1484_v10 = vrot.slane %v1483_v6, 2  ;;  %v1496_v11 = vrot.slane %v1495_v7, 2 }
 0x295   :  { %v1490_v12 = vrot.slane %v1489_v8, 2  ;;  %v1502_v13 = vrot.slane %v1501_v9, 2 }
 0x296   :  { %v1485_v14 = vadd.f32 %v1484_v10, %v1483_v6  ;;  %v1497_v15 = vadd.f32 %v1496_v11, %v1495_v7  ;;  %v1480_v10 = vld [vmem:[%s3684_s7] sm:$0xf] }
 0x297   :  { %v1491_v17 = vadd.f32 %v1490_v12, %v1489_v8  ;;  %v1503_v19 = vadd.f32 %v1502_v13, %v1501_v9  ;;  %v1481_v11 = vld [vmem:[%s3685_s8] sm:$0xf]  ;;  %v1562_v12 = vrot.slane %v1480_v10, %v3602_v38 }
 0x298   :  { %v1486_v20 = vrot.slane %v1485_v14, 1  ;;  %v1498_v21 = vrot.slane %v1497_v15, 1 }
 0x299   :  { %v1492_v22 = vrot.slane %v1491_v17, 1  ;;  %v1504_v23 = vrot.slane %v1503_v19, 1 }
 0x29a   :  { %v1487_v24 = vadd.f32 %v1486_v20, %v1485_v14  ;;  %v1499_v25 = vadd.f32 %v1498_v21, %v1497_v15  ;;  %v1570_v14 = vrot.slane %v1480_v10, %v3611_v44  ;;  %v1587_v20 = vrot.slane %v1481_v11, %v3602_v38 }
 0x29b   :  { %v1493_v16 = vadd.f32 %v1492_v22, %v1491_v17  ;;  %v1505_v26 = vadd.f32 %v1504_v23, %v1503_v19  ;;  %v1566_v19 = vrot.slane %v1480_v10, %v3607_v40  ;;  %v1574_v23 = vrot.slane %v1480_v10, %v3613_v47  ;;  %v3289_v10 = vld [vmem:[#allocation8 + $0x2e0] ss:$16 sps:$4 sm:$0xff]  }
 0x29c   :  { %v1506_v18 = vmul.f32 0.125, %v1487_v24  ;;  %v1508_v27 = vmul.f32 0.125, %v1499_v25  ;;  %v1595_v24 = vrot.slane %v1481_v11, %v3611_v44 }
 0x29d   :  { %v1507_v28 = vmul.f32 0.125, %v1493_v16  ;;  %v1509_v29 = vmul.f32 0.125, %v1505_v26 }
 0x29e   :  { %v1510_v30 = vsub.f32 %v2879_v56, %v1506_v18  ;;  %v1512_v32 = vsub.f32 %v2881_v57, %v1508_v27  ;;  %v1591_v18 = vrot.slane %v1481_v11, %v3607_v40 }
 0x29f   :  { %v1511_v34 = vsub.f32 %v2880_v60, %v1507_v28  ;;  %v1513_v35 = vsub.f32 %v2882_v61, %v1509_v29  ;;  %v1599_v29 = vrot.slane %v1481_v11, %v3613_v47  ;;  %v3292_v11 = vld [vmem:[#allocation8 + $0x2e8] ss:$16 sps:$4 sm:$0xff]  }
 0x2a0   :  { %v1514_v36 = vmul.f32 %v1510_v30, %v1510_v30  ;;  %v1516_v31 = vmul.f32 %v1512_v32, %v1512_v32 }
 0x2a1   :  { %v1515_v33 = vmul.f32 %v1511_v34, %v1511_v34  ;;  %v1517_v39 = vmul.f32 %v1513_v35, %v1513_v35 }
 0x2a2   :  { %v1518_v41 = vrot.slane %v1514_v36, 4  ;;  %v1530_v42 = vrot.slane %v1516_v31, 4 }
 0x2a3   :  { %v1524_v43 = vrot.slane %v1515_v33, 4  ;;  %v1536_v45 = vrot.slane %v1517_v39, 4 }
 0x2a4   :  { %v1519_v46 = vadd.f32 %v1518_v41, %v1514_v36  ;;  %v1531_v48 = vadd.f32 %v1530_v42, %v1516_v31 }
 0x2a5   :  { %v1525_v49 = vadd.f32 %v1524_v43, %v1515_v33  ;;  %v1537_v50 = vadd.f32 %v1536_v45, %v1517_v39 }
 0x2a6   :  { %v1520_v51 = vrot.slane %v1519_v46, 2  ;;  %v1532_v37 = vrot.slane %v1531_v48, 2 }
 0x2a7   :  { %v1526_v52 = vrot.slane %v1525_v49, 2  ;;  %v1538_v53 = vrot.slane %v1537_v50, 2 }
 0x2a8   :  { %v1521_v54 = vadd.f32 %v1520_v51, %v1519_v46  ;;  %v1533_v55 = vadd.f32 %v1532_v37, %v1531_v48  ;;  %v3247_v46 = vld [vmem:[#allocation8 + $0x200] ss:$16 sps:$4 sm:$0xff]   ;;  %v3250_v48 = vld [vmem:[#allocation8 + $0x208] ss:$16 sps:$4 sm:$0xff]  }
 0x2a9   :  { %v1527_v56 = vadd.f32 %v1526_v52, %v1525_v49  ;;  %v1539_v57 = vadd.f32 %v1538_v53, %v1537_v50  ;;  %v3255_v49 = vld [vmem:[#allocation8 + $0x224] ss:$16 sps:$4 sm:$0xff]   ;;  %v3253_v51 = vld [vmem:[#allocation8 + $0x220] ss:$16 sps:$4 sm:$0xff]   ;;  %v3256_v37 = vld [vmem:[#allocation8 + $0x228] ss:$16 sps:$4 sm:$0xff]  }
 0x2aa   :  { %v1522_v58 = vrot.slane %v1521_v54, 1  ;;  %v1534_v59 = vrot.slane %v1533_v55, 1  ;;  %v3261_v52 = vld [vmem:[#allocation8 + $0x244] ss:$16 sps:$4 sm:$0xff]   ;;  %v3264_v53 = vld [vmem:[#allocation8 + $0x24c] ss:$16 sps:$4 sm:$0xff]  }
 0x2ab   :  { %v1528_v60 = vrot.slane %v1527_v56, 1  ;;  %v1540_v61 = vrot.slane %v1539_v57, 1 }
 0x2ac   :  { %v1523_v62 = vadd.f32 %v1522_v58, %v1521_v54  ;;  %v1535_v63 = vadd.f32 %v1534_v59, %v1533_v55  ;;  %v3259_v54 = vld [vmem:[#allocation8 + $0x240] ss:$16 sps:$4 sm:$0xff]   ;;  %v3262_v55 = vld [vmem:[#allocation8 + $0x248] ss:$16 sps:$4 sm:$0xff]  }
 0x2ad   :  { %v1529_v0 = vadd.f32 %v1528_v60, %v1527_v56  ;;  %v1541_v1 = vadd.f32 %v1540_v61, %v1539_v57  ;;  %v3267_v56 = vld [vmem:[#allocation8 + $0x264] ss:$16 sps:$4 sm:$0xff]   ;;  %v3270_v57 = vld [vmem:[#allocation8 + $0x26c] ss:$16 sps:$4 sm:$0xff]   ;;  %v3265_v58 = vld [vmem:[#allocation8 + $0x260] ss:$16 sps:$4 sm:$0xff]  }
 0x2ae   :  { %v1542_v2 = vmul.f32 0.125, %v1523_v62  ;;  %v1544_v3 = vmul.f32 0.125, %v1535_v63  ;;  %v3268_v59 = vld [vmem:[#allocation8 + $0x268] ss:$16 sps:$4 sm:$0xff]   ;;  %v3273_v60 = vld [vmem:[#allocation8 + $0x284] ss:$16 sps:$4 sm:$0xff]  }
 0x2af   :  { %v1543_v4 = vmul.f32 0.125, %v1529_v0  ;;  %v1545_v5 = vmul.f32 0.125, %v1541_v1  ;;  %v3276_v61 = vld [vmem:[#allocation8 + $0x28c] ss:$16 sps:$4 sm:$0xff]   ;;  %v3271_v62 = vld [vmem:[#allocation8 + $0x280] ss:$16 sps:$4 sm:$0xff]  }
 0x2b0   :  { %v1546_v6 = vadd.f32 1e-05, %v1542_v2  ;;  %v1548_v7 = vadd.f32 1e-05, %v1544_v3  ;;  %v3274_v63 = vld [vmem:[#allocation8 + $0x288] ss:$16 sps:$4 sm:$0xff]  }
 0x2b1   :  { %v1547_v8 = vadd.f32 1e-05, %v1543_v4  ;;  %v1549_v9 = vadd.f32 1e-05, %v1545_v5  ;;  %v3279_v0 = vld [vmem:[#allocation8 + $0x2a4] ss:$16 sps:$4 sm:$0xff]  }
 0x2b2   :  { %3351 = vrsqrt.f32 %v1546_v6  ;;  %v3282_v1 = vld [vmem:[#allocation8 + $0x2ac] ss:$16 sps:$4 sm:$0xff]   ;;  %v3277_v2 = vld [vmem:[#allocation8 + $0x2a0] ss:$16 sps:$4 sm:$0xff]   ;;  %v3280_v3 = vld [vmem:[#allocation8 + $0x2a8] ss:$16 sps:$4 sm:$0xff]  }
 0x2b3   :  { %3353 = vrsqrt.f32 %v1548_v7  ;;  %v3285_v4 = vld [vmem:[#allocation8 + $0x2c4] ss:$16 sps:$4 sm:$0xff]   ;;  %v3288_v5 = vld [vmem:[#allocation8 + $0x2cc] ss:$16 sps:$4 sm:$0xff]   ;;  %v3283_v6 = vld [vmem:[#allocation8 + $0x2c0] ss:$16 sps:$4 sm:$0xff]  }
 0x2b4   :  { %3355 = vrsqrt.f32 %v1547_v8  ;;  %v3286_v7 = vld [vmem:[#allocation8 + $0x2c8] ss:$16 sps:$4 sm:$0xff]   ;;  %v3291_v8 = vld [vmem:[#allocation8 + $0x2e4] ss:$16 sps:$4 sm:$0xff]  }
 0x2b5   :  { %3357 = vrsqrt.f32 %v1549_v9  ;;  %v3294_v9 = vld [vmem:[#allocation8 + $0x2ec] ss:$16 sps:$4 sm:$0xff]  }
 0x2bc   :  { %v3352_v13 = vpop.eup %3351 }
 0x2bd   :  { %v3354_v15 = vpop.eup %3353  ;;  %v1554_v17 = vmul.f32 %v3352_v13, %v1510_v30  ;;  %v3300_v13 = vld [vmem:[#allocation8 + $0x30c] ss:$16 sps:$4 sm:$0xff]  }
 0x2be   :  { %v3356_v21 = vpop.eup %3355  ;;  %v1556_v22 = vmul.f32 %v3354_v15, %v1512_v32  ;;  %v3298_v15 = vld [vmem:[#allocation8 + $0x308] ss:$16 sps:$4 sm:$0xff]  }
 0x2bf   :  { %v3358_v25 = vpop.eup %3357  ;;  %v1579_v16 = vmul.f32 %v1562_v12, %v1554_v17  ;;  %v1555_v26 = vmul.f32 %v3356_v21, %v1511_v34  ;;  %v3297_v12 = vld [vmem:[#allocation8 + $0x304] ss:$16 sps:$4 sm:$0xff]   ;;  %v3304_v21 = vld [vmem:[#allocation8 + $0x328] ss:$16 sps:$4 sm:$0xff]  }
 0x2c0   :  { %v1581_v27 = vmul.f32 %v1570_v14, %v1556_v22  ;;  %v1557_v28 = vmul.f32 %v3358_v25, %v1513_v35  ;;  %v3258_v35 = vld [vmem:[#allocation8 + $0x22c] ss:$16 sps:$4 sm:$0xff]   ;;  %v3295_v14 = vld [vmem:[#allocation8 + $0x300] ss:$16 sps:$4 sm:$0xff]   ;;  %v3303_v17 = vld [vmem:[#allocation8 + $0x324] ss:$16 sps:$4 sm:$0xff]  }
 0x2c1   :  { %v1580_v30 = vmul.f32 %v1566_v19, %v1555_v26  ;;  %v1604_v36 = vadd.f32 %v1587_v20, %v1579_v16  ;;  %v3306_v19 = vld [vmem:[#allocation8 + $0x32c] ss:$16 sps:$4 sm:$0xff]   ;;  %v3301_v20 = vld [vmem:[#allocation8 + $0x320] ss:$16 sps:$4 sm:$0xff]   ;;  %v3309_v22 = vld [vmem:[#allocation8 + $0x344] ss:$16 sps:$4 sm:$0xff]  }
 0x2c2   :  { %v1582_v31 = vmul.f32 %v1574_v23, %v1557_v28  ;;  %v3655_v33 = vadd.f32 %v1595_v24, %v1581_v27  ;;  %v3312_v23 = vld [vmem:[#allocation8 + $0x34c] ss:$16 sps:$4 sm:$0xff]   ;;  %v3307_v24 = vld [vmem:[#allocation8 + $0x340] ss:$16 sps:$4 sm:$0xff]   ;;  %v3310_v25 = vld [vmem:[#allocation8 + $0x348] ss:$16 sps:$4 sm:$0xff]  }
 0x2c3   :  { %v1605_v39 = vadd.f32 %v1591_v18, %v1580_v30  ;;  %v1608_v32 = vmax.f32 %v1604_v36, 0.0  ;;  %v3315_v16 = vld [vmem:[#allocation8 + $0x364] ss:$16 sps:$4 sm:$0xff]   ;;  %v3318_v26 = vld [vmem:[#allocation8 + $0x36c] ss:$16 sps:$4 sm:$0xff]  }
 0x2c4   :  { %v1607_v41 = vadd.f32 %v1599_v29, %v1582_v31  ;;  %v3313_v18 = vld [vmem:[#allocation8 + $0x360] ss:$16 sps:$4 sm:$0xff]   ;;  %v3316_v27 = vld [vmem:[#allocation8 + $0x368] ss:$16 sps:$4 sm:$0xff]   ;;  %v3321_v28 = vld [vmem:[#allocation8 + $0x384] ss:$16 sps:$4 sm:$0xff]  }
 0x2c5   :  { %v1609_v42 = vmax.f32 %v1605_v39, 0.0  ;;  %v1612_v34 = vpack.c.bf16 %v1608_v32, %v1608_v32  ;;  %v3324_v29 = vld [vmem:[#allocation8 + $0x38c] ss:$16 sps:$4 sm:$0xff]   ;;  %v3319_v30 = vld [vmem:[#allocation8 + $0x380] ss:$16 sps:$4 sm:$0xff]  }
 0x2c6   :  { %v1611_v43 = vmax.f32 %v1607_v41, 0.0  ;;  %v3322_v36 = vld [vmem:[#allocation8 + $0x388] ss:$16 sps:$4 sm:$0xff]   ;;  %v3327_v31 = vld [vmem:[#allocation8 + $0x3a4] ss:$16 sps:$4 sm:$0xff]  }
 0x2c7   :  { %v1613_v45 = vpack.c.bf16 %v1609_v42, %v1609_v42  ;;  %v3330_v39 = vld [vmem:[#allocation8 + $0x3ac] ss:$16 sps:$4 sm:$0xff]   ;;  %v3325_v32 = vld [vmem:[#allocation8 + $0x3a0] ss:$16 sps:$4 sm:$0xff]   ;;  %v3328_v41 = vld [vmem:[#allocation8 + $0x3a8] ss:$16 sps:$4 sm:$0xff]  }
 0x2c8   :  { %v1615_v50 = vpack.c.bf16 %v1611_v43, %v1611_v43  ;;  %v3333_v42 = vld [vmem:[#allocation8 + $0x3c4] ss:$16 sps:$4 sm:$0xff]   ;;  %v3336_v43 = vld [vmem:[#allocation8 + $0x3cc] ss:$16 sps:$4 sm:$0xff]  }
 0x2c9   :  { %2438 = vmatprep.mubr.bf16.mxu0 %v1613_v45  ;;  %2520 = vmatprep.mubr.bf16.mxu1 %v1613_v45  ;;  %v3331_v45 = vld [vmem:[#allocation8 + $0x3c0] ss:$16 sps:$4 sm:$0xff]  }
 0x2ca   :  { %2439 = vmatmul.mubr.bf16.vlgmr.msra.gmra.mrb[8].mxu0 %v1612_v34  ;;  %2521 = vmatmul.mubr.bf16.vlgmr.msra.gmra.mrb[8].mxu1 %v1612_v34  ;;  %v3342_v34 = vld [vmem:[#allocation8 + $0x3ec] ss:$16 sps:$4 sm:$0xff]  }
 0x2cb   :  { %2448 = vmatpush1.bf16.msra.mxu0 %v3247_v46  ;;  %2530 = vmatpush1.bf16.msra.mxu1 %v3250_v48  ;;  %v3334_v46 = vld [vmem:[#allocation8 + $0x3c8] ss:$16 sps:$4 sm:$0xff]   ;;  %v3339_v48 = vld [vmem:[#allocation8 + $0x3e4] ss:$16 sps:$4 sm:$0xff]  }
 0x2cc   :  { %2479 = vmatprep.mubr.bf16.mxu0 %v1615_v50  ;;  %2561 = vmatprep.mubr.bf16.mxu1 %v1615_v50  ;;  %v1610_v50 = vmax.f32 %v3655_v33, 0.0 }
 0x2cd   :  { %2449 = vmatprep.subr.bf16.mxu0 %v3255_v49  ;;  %2531 = vmatprep.subr.bf16.mxu1 %v3258_v35  ;;  %v3337_v49 = vld [vmem:[#allocation8 + $0x3e0] ss:$16 sps:$4 sm:$0xff]   ;;  %v3340_v35 = vld [vmem:[#allocation8 + $0x3e8] ss:$16 sps:$4 sm:$0xff]  }
 0x2cf   :  { %2450 = vmatpush1.bf16.msra.mxu0 %v3253_v51  ;;  %2532 = vmatpush1.bf16.msra.mxu1 %v3256_v37  ;;  %v1614_v51 = vpack.c.bf16 %v1610_v50, %v1610_v50  ;;  %v1744_v37 = vld [vmem:[%s3687_s10] sm:$0xf]  ;;  %s3447_s10 = scalar_lea.vmem %s2581_s0, 512 }
 0x2d0   :  { %2451 = vmatprep.subr.bf16.mxu0 %v3261_v52  ;;  %2533 = vmatprep.subr.bf16.mxu1 %v3264_v53  ;;  %v1749_v52 = vrot.slane %v1744_v37, %v3602_v38  ;;  %v1757_v53 = vrot.slane %v1744_v37, %v3611_v44  ;;  %p3448_p4 = scmp.ne.s32.totalorder %s2581_s0, %s3447_s10  ;;  %p3453_p6 = scmp.lt.s32.totalorder %s3447_s10, %s3447_s10 }
 0x2d2   :  { %p3454_p7 = por %p3453_p6, %p3452_p5 }
 0x2d3   :  { %2452 = vmatpush1.bf16.msra.mxu0 %v3259_v54  ;;  %2534 = vmatpush1.bf16.msra.mxu1 %v3262_v55  ;;  %v1753_v54 = vrot.slane %v1744_v37, %v3607_v40  ;;  %v1761_v55 = vrot.slane %v1744_v37, %v3613_v47 }
 0x2d4   :  { %2453 = vmatprep.subr.bf16.mxu0 %v3267_v56  ;;  %2535 = vmatprep.subr.bf16.mxu1 %v3270_v57  ;;  %p3455_p8 = pnand %p3454_p7, %p3448_p4 }
 0x2d7   :  { %2454 = vmatpush1.bf16.msra.mxu0 %v3265_v58  ;;  %2536 = vmatpush1.bf16.msra.mxu1 %v3268_v59 }
 0x2d8   :  { %2455 = vmatprep.subr.bf16.mxu0 %v3273_v60  ;;  %2537 = vmatprep.subr.bf16.mxu1 %v3276_v61 }
 0x2db   :  { %2456 = vmatpush1.bf16.msra.mxu0 %v3271_v62  ;;  %2538 = vmatpush1.bf16.msra.mxu1 %v3274_v63 }
 0x2dc   :  { %2457 = vmatprep.subr.bf16.mxu0 %v3279_v0  ;;  %2539 = vmatprep.subr.bf16.mxu1 %v3282_v1 }
 0x2df   :  { %2458 = vmatpush1.bf16.msra.mxu0 %v3277_v2  ;;  %2540 = vmatpush1.bf16.msra.mxu1 %v3280_v3 }
 0x2e0   :  { %2459 = vmatprep.subr.bf16.mxu0 %v3285_v4  ;;  %2541 = vmatprep.subr.bf16.mxu1 %v3288_v5 }
 0x2e3   :  { %2460 = vmatpush1.bf16.msra.mxu0 %v3283_v6  ;;  %2542 = vmatpush1.bf16.msra.mxu1 %v3286_v7 }
 0x2e4   :  { %2461 = vmatprep.subr.bf16.mxu0 %v3291_v8  ;;  %2543 = vmatprep.subr.bf16.mxu1 %v3294_v9 }
 0x2e7   :  { %2462 = vmatpush1.bf16.msra.mxu0 %v3289_v10  ;;  %2544 = vmatpush1.bf16.msra.mxu1 %v3292_v11 }
 0x2e8   :  { %2463 = vmatprep.subr.bf16.mxu0 %v3297_v12  ;;  %2545 = vmatprep.subr.bf16.mxu1 %v3300_v13 }
 0x2eb   :  { %2464 = vmatpush1.bf16.msra.mxu0 %v3295_v14  ;;  %2546 = vmatpush1.bf16.msra.mxu1 %v3298_v15 }
 0x2ec   :  { %2465 = vmatprep.subr.bf16.mxu0 %v3303_v17  ;;  %2547 = vmatprep.subr.bf16.mxu1 %v3306_v19 }
 0x2ef   :  { %2466 = vmatpush1.bf16.msra.mxu0 %v3301_v20  ;;  %2548 = vmatpush1.bf16.msra.mxu1 %v3304_v21 }
 0x2f0   :  { %2467 = vmatprep.subr.bf16.mxu0 %v3309_v22  ;;  %2549 = vmatprep.subr.bf16.mxu1 %v3312_v23 }
 0x2f3   :  { %2468 = vmatpush1.bf16.msra.mxu0 %v3307_v24  ;;  %2550 = vmatpush1.bf16.msra.mxu1 %v3310_v25 }
 0x2f4   :  { %2469 = vmatprep.subr.bf16.mxu0 %v3315_v16  ;;  %2551 = vmatprep.subr.bf16.mxu1 %v3318_v26 }
 0x2f7   :  { %2470 = vmatpush1.bf16.msra.mxu0 %v3313_v18  ;;  %2552 = vmatpush1.bf16.msra.mxu1 %v3316_v27 }
 0x2f8   :  { %2471 = vmatprep.subr.bf16.mxu0 %v3321_v28  ;;  %2553 = vmatprep.subr.bf16.mxu1 %v3324_v29 }
 0x2fb   :  { %2472 = vmatpush1.bf16.msra.mxu0 %v3319_v30  ;;  %2554 = vmatpush1.bf16.msra.mxu1 %v3322_v36 }
 0x2fc   :  { %2473 = vmatprep.subr.bf16.mxu0 %v3327_v31  ;;  %2555 = vmatprep.subr.bf16.mxu1 %v3330_v39 }
 0x2ff   :  { %2474 = vmatpush1.bf16.msra.mxu0 %v3325_v32  ;;  %2556 = vmatpush1.bf16.msra.mxu1 %v3328_v41 }
 0x300   :  { %2475 = vmatprep.subr.bf16.mxu0 %v3333_v42  ;;  %2557 = vmatprep.subr.bf16.mxu1 %v3336_v43 }
 0x303   :  { %2476 = vmatpush1.bf16.msra.mxu0 %v3331_v45  ;;  %2558 = vmatpush1.bf16.msra.mxu1 %v3334_v46 }
 0x304   :  { %2477 = vmatprep.subr.bf16.mxu0 %v3339_v48  ;;  %2559 = vmatprep.subr.bf16.mxu1 %v3342_v34 }
 0x307   :  { %2478 = vmatpush1.bf16.msra.mxu0 %v3337_v49  ;;  %2560 = vmatpush1.bf16.msra.mxu1 %v3340_v35 }
 0x30a   :  { %2480 = vmatmul.mubr.bf16.vlgmr.msra.gmra.mrb[8].mxu0 %v1614_v51  ;;  %2562 = vmatmul.mubr.bf16.vlgmr.msra.gmra.mrb[8].mxu1 %v1614_v51 }
 0x3dd   :  { %v2481_v33 = vpop.f32.mrb[8].mxu0  ;;  %v2563_v56 = vpop.f32.mrb[8].mxu1 }
 0x3de   :  { %v2883_v57 = vadd.f32 %v2481_v33, %v1749_v52  ;;  %v2885_v58 = vadd.f32 %v2563_v56, %v1757_v53  ;;  %v2483_v59 = vpop.f32.mrb[9].mxu0  ;;  %v2565_v60 = vpop.f32.mrb[9].mxu1 }
 0x3df   :  { %v2884_v61 = vadd.f32 %v2483_v59, %v1753_v54  ;;  %v2886_v62 = vadd.f32 %v2565_v60, %v1761_v55  ;;  %v2485_v63 = vpop.f32.mrb[10].mxu0  ;;  %v2567_v0 = vpop.f32.mrb[10].mxu1 }
 0x3e0   :  { %2570 = vst [vmem:[#allocation10] sm:$0xff] %v2883_v57  ;;  %2572 = vst [vmem:[#allocation10 + $0x10] sm:$0xff] %v2885_v58  ;;  %v2486_v38 = vpop.f32.mrb[11].mxu0  ;;  %v2568_v44 = vpop.f32.mrb[11].mxu1 }
 0x3e1   :  { %2571 = vst [vmem:[#allocation10 + $0x8] sm:$0xff] %v2884_v61  ;;  %2573 = vst [vmem:[#allocation10 + $0x18] sm:$0xff] %v2886_v62 }
 0x3e2   :  { %3458 = shalt.err (!%p3455_p8)
}
 0x3e3   :  { %s3459_s20 = scalar_lea.hbm %s3688_s11, 512 }
 0x3e4   :  { %p3460_p9 = scmp.ne.s32.totalorder %s3688_s11, %s3459_s20  ;;  %p3463_p10 = scmp.lt.u32.totalorder %s3459_s20, %s3688_s11 }
 0x3e6   :  { %p3465_p11 = pnand %p3463_p10, %p3460_p9 }
 0x3e8   :  { %3468 = shalt.err (!%p3465_p11)
}
 0x3e9   :  { %2583 = dma.vmem_to_hbm [thread:$0]  %s2581_s0, 512, %s3688_s11, [#allocation4]  }
 0x3ea   :  { %3475 = dma.done.wait [#allocation4], 512  }
 0x3eb   :  { %3476 = vsyncadd [#allocation4], 4294966784 }
 0x3ec   :  { %2587 = vsyncpa [#allocation3], 1 }
 0x3ed   :  { %2588 = vsyncpa [#allocation6], 1 }
 0x3ee   :  { %2589 = vsyncpa [#allocation9], 1 }
 0x3ef   :  { %2590 = vsyncpa [#allocation4], 1 }

</bundles_post_ra>
